<compile_context>
chip_gen: v5e
topology: v5e:2x2
jax: 0.10.0
libtpu: 0.0.40
codegen_flags: <defaults>
</compile_context>

<pallas_src>
import jax
import jax.numpy as jnp
from jax import lax
from jax.experimental import pallas as pl
from jax.experimental.pallas import tpu as pltpu

SIZE_2 = 4                  # Size_2 in the PyTorch script
IMG = 4 * SIZE_2            # 16x16 input images, 1 channel
K = 5                       # conv kernel size
PAD = 2                     # conv padding
C1, C2 = 5, 8               # conv output channels
H1, H2, H3 = IMG, IMG // 2, IMG // 4      # 16, 8, 4
Q1 = 3 * 128                # quadrant block for conv1: 5*8*8 = 320 -> lane-pad to 384
Q2 = C2 * H3 * H3           # quadrant block for conv2: 8*4*4 = 128 (already aligned)
NCLASS = 5
OUT_PAD = 128               # lane-dense logits; wrapper slices [:, :5]


# ---------------------------------------------------------------------------
# The single fused kernel: 5 MXU matmuls + aligned-lane-slice pooling + ReLU
# ---------------------------------------------------------------------------
def fused_net_kernel(x_ref, w1_ref, b1_ref, w2_ref, b2_ref,
                     f1w_ref, f1b_ref, f2w_ref, f2b_ref, f3w_ref, f3b_ref,
                     o_ref):
    # conv1 (padding folded into w1) as one (BN,256)x(256,1536) MXU dot.
    z1 = jnp.dot(x_ref[...], w1_ref[...],
                 preferred_element_type=jnp.float32) + b1_ref[...]
    # 2x2 max-pool = max over the four aligned 384-lane quadrant slices, + ReLU.
    a1 = jnp.maximum(
        jnp.maximum(jnp.maximum(z1[:, 0:Q1], z1[:, Q1:2 * Q1]),
                    jnp.maximum(z1[:, 2 * Q1:3 * Q1], z1[:, 3 * Q1:4 * Q1])),
        0.0)

    # conv2 as one (BN,384)x(384,512) MXU dot (zero rows for the 64 pad lanes).
    z2 = jnp.dot(a1, w2_ref[...],
                 preferred_element_type=jnp.float32) + b2_ref[...]
    a2 = jnp.maximum(
        jnp.maximum(jnp.maximum(z2[:, 0:Q2], z2[:, Q2:2 * Q2]),
                    jnp.maximum(z2[:, 2 * Q2:3 * Q2], z2[:, 3 * Q2:4 * Q2])),
        0.0)                                           # (BN, 128) == PyTorch flatten

    # Classifier fused in the same kernel.
    h = jnp.maximum(jnp.dot(a2, f1w_ref[...],
                            preferred_element_type=jnp.float32) + f1b_ref[...], 0.0)
    h = jnp.maximum(jnp.dot(h, f2w_ref[...],
                            preferred_element_type=jnp.float32) + f2b_ref[...], 0.0)
    o_ref[...] = jnp.dot(h, f3w_ref[...],
                         preferred_element_type=jnp.float32) + f3b_ref[...]


# ---------------------------------------------------------------------------
# Parameter-only preprocessing: conv kernel -> dense conv+pool-quadrant matrix
# ---------------------------------------------------------------------------
def _conv_pool_matrix(w_oihw, bias, h_in, pad_to):
    """Return (mat, bias_row) with
       mat   : (Cin*H*W, 4*pad_to)
       bias_row: (1, 4*pad_to)
    such that for an image flattened in (ci, hi, wi) order:
       (x @ mat + bias_row)[:, q*pad_to + co*Ho*Wo + ho*Wo + wo]
         = Conv2d(w, bias, stride=1, pad=2)(x)[co, 2*ho + q//2, 2*wo + q%2]
    i.e. the conv output rearranged into the four 2x2-pool quadrants
    (lane-padded per quadrant), so pooling is a max over aligned lane slices.
    """
    co_n, ci_n, kk, _ = w_oihw.shape
    H = W = h_in
    Ho, Wo = H // 2, W // 2
    idx = jnp.arange(H)
    kh = idx[:, None] - idx[None, :] + PAD            # (in_pos, out_pos)
    vh = (kh >= 0) & (kh < kk)
    khc = jnp.clip(kh, 0, kk - 1)
    # T[co, ci, hi, hf, wi, wf] = w[co, ci, hi-hf+PAD, wi-wf+PAD] (masked)
    T = w_oihw[:, :, khc[:, :, None, None], khc[None, None, :, :]]
    valid = vh[:, :, None, None] & vh[None, None, :, :]
    T = jnp.where(valid[None, None], T, 0.0)
    # split full-res output (hf, wf) into (ho, dh), (wo, dw); regroup to
    # rows = (ci, hi, wi), cols = (dh, dw | co, ho, wo)
    T = T.reshape(co_n, ci_n, H, Ho, 2, W, Wo, 2)
    T = jnp.transpose(T, (1, 2, 5, 4, 7, 0, 3, 6))
    T = T.reshape(ci_n * H * W, 4, co_n * Ho * Wo)
    T = jnp.pad(T, ((0, 0), (0, 0), (0, pad_to - co_n * Ho * Wo)))
    mat = T.reshape(ci_n * H * W, 4 * pad_to)
    brow = jnp.pad(jnp.repeat(bias, Ho * Wo), (0, pad_to - co_n * Ho * Wo))
    brow = jnp.tile(brow, 4).reshape(1, 4 * pad_to)
    return mat, brow


def _choose_block_n(n, block_n_max):
    # >=2 grid steps when there is enough work (v7x: 2 TCs share the parallel
    # batch axis); multiple of 8 for the sublane tile.
    bn = min(block_n_max, max(8, (n + 1) // 2))
    return ((bn + 7) // 8) * 8


def fused_forward(x2d, w1, b1, w2, b2, f1w, f1b, f2w, f2b, f3w, f3b, *, block_n):
    n = x2d.shape[0]

    def fullspec(a):
        return pl.BlockSpec(a.shape, lambda i: (0, 0))

    return pl.pallas_call(
        fused_net_kernel,
        out_shape=jax.ShapeDtypeStruct((n, OUT_PAD), jnp.float32),
        grid=(n // block_n,),
        in_specs=[pl.BlockSpec((block_n, IMG * IMG), lambda i: (i, 0)),
                  fullspec(w1), fullspec(b1), fullspec(w2), fullspec(b2),
                  fullspec(f1w), fullspec(f1b), fullspec(f2w), fullspec(f2b),
                  fullspec(f3w), fullspec(f3b)],
        out_specs=pl.BlockSpec((block_n, OUT_PAD), lambda i: (i, 0)),
        compiler_params=pltpu.CompilerParams(
            dimension_semantics=("parallel",),      # batch tiles -> both TCs on v7x
            vmem_limit_bytes=32 * 1024 * 1024),
    )(x2d, w1, b1, w2, b2, f1w, f1b, f2w, f2b, f3w, f3b)


# ---------------------------------------------------------------------------
# Public wrapper: NCHW input + PyTorch-layout params (OIHW conv, (out,in) fc)
# ---------------------------------------------------------------------------
def pallas_net_forward(x_nchw, params, *, block_n=256):
    n = x_nchw.shape[0]
    x = x_nchw.reshape(n, IMG * IMG).astype(jnp.float32)   # (ci=0, hi, wi) flat
    bn = _choose_block_n(n, block_n)
    n_pad = (-n) % bn
    if n_pad:
        x = jnp.pad(x, ((0, n_pad), (0, 0)))

    # Parameter-only layout plumbing (done once per call, outside the kernel).
    w1, b1 = _conv_pool_matrix(params["c1w"], params["c1b"], H1, Q1)  # (256,1536)
    w2, b2 = _conv_pool_matrix(params["c2w"], params["c2b"], H2, Q2)  # (320, 512)
    w2 = jnp.pad(w2, ((0, Q1 - w2.shape[0]), (0, 0)))                 # rows 320->384
    f1w = params["f1w"].T                       # (128,120): (c,h,w) flatten matches a2
    f2w = params["f2w"].T                       # (120, 84)
    f3w = jnp.pad(params["f3w"].T, ((0, 0), (0, OUT_PAD - NCLASS)))   # (84, 128)
    f3b = jnp.pad(params["f3b"], (0, OUT_PAD - NCLASS)).reshape(1, -1)

    out = fused_forward(x, w1, b1, w2, b2,
                        f1w, params["f1b"].reshape(1, -1),
                        f2w, params["f2b"].reshape(1, -1),
                        f3w, f3b, block_n=bn)
    return out[:n, :NCLASS]


# ---------------------------------------------------------------------------
# Deterministic synthetic parameters (PyTorch layouts)
# ---------------------------------------------------------------------------
def init_params(key):
    ks = jax.random.split(key, 10)
    s = 0.1
    return {
        "c1w": s * jax.random.normal(ks[0], (5, 1, 5, 5), jnp.float32),
        "c1b": s * jax.random.normal(ks[1], (5,), jnp.float32),
        "c2w": s * jax.random.normal(ks[2], (8, 5, 5, 5), jnp.float32),
        "c2b": s * jax.random.normal(ks[3], (8,), jnp.float32),
        "f1w": s * jax.random.normal(ks[4], (120, 8 * SIZE_2 * SIZE_2), jnp.float32),
        "f1b": s * jax.random.normal(ks[5], (120,), jnp.float32),
        "f2w": s * jax.random.normal(ks[6], (84, 120), jnp.float32),
        "f2b": s * jax.random.normal(ks[7], (84,), jnp.float32),
        "f3w": s * jax.random.normal(ks[8], (5, 84), jnp.float32),
        "f3b": s * jax.random.normal(ks[9], (5,), jnp.float32),
    }


# Pure-JAX reference mirroring the PyTorch module exactly (NCHW, CHW flatten)
def reference_forward(x, p):
    hi = lax.Precision.HIGHEST
    y = lax.conv_general_dilated(x, p["c1w"], (1, 1), ((2, 2), (2, 2)),
                                 dimension_numbers=("NCHW", "OIHW", "NCHW"),
                                 precision=hi) + p["c1b"][None, :, None, None]
    y = lax.reduce_window(y, -jnp.inf, lax.max, (1, 1, 2, 2), (1, 1, 2, 2), "VALID")
    y = jnp.maximum(y, 0.0)
    y = lax.conv_general_dilated(y, p["c2w"], (1, 1), ((2, 2), (2, 2)),
                                 dimension_numbers=("NCHW", "OIHW", "NCHW"),
                                 precision=hi) + p["c2b"][None, :, None, None]
    y = lax.reduce_window(y, -jnp.inf, lax.max, (1, 1, 2, 2), (1, 1, 2, 2), "VALID")
    y = jnp.maximum(y, 0.0)
    y = y.reshape(y.shape[0], -1)
    y = jnp.maximum(jnp.dot(y, p["f1w"].T, precision=hi) + p["f1b"], 0.0)
    y = jnp.maximum(jnp.dot(y, p["f2w"].T, precision=hi) + p["f2b"], 0.0)
    return jnp.dot(y, p["f3w"].T, precision=hi) + p["f3b"]


if __name__ == "__main__":
    key = jax.random.PRNGKey(0)
    pkey, xkey = jax.random.split(key)
    params = init_params(pkey)
    x = jax.random.normal(xkey, (2, 1, IMG, IMG), jnp.float32)   # NCHW, like PyTorch

    out = jax.jit(pallas_net_forward)(x, params)
    out = jax.block_until_ready(out)

    ref = reference_forward(x, params)
    assert out.shape == (2, NCLASS), out.shape
    err = float(jnp.max(jnp.abs(out - ref)))
    assert err < 2e-2, f"max abs err vs reference: {err}"
    print("KERNEL_OK")
</pallas_src>

<mosaic_0001>
module attributes {stable_mosaic.version = 11 : i64} {
  func.func @fused_net_kernel(%arg0: i32, %arg1: memref<8x256xf32, #tpu.memory_space<vmem>>, %arg2: memref<256x1536xf32, #tpu.memory_space<vmem>>, %arg3: memref<1x1536xf32, #tpu.memory_space<vmem>>, %arg4: memref<384x512xf32, #tpu.memory_space<vmem>>, %arg5: memref<1x512xf32, #tpu.memory_space<vmem>>, %arg6: memref<128x120xf32, #tpu.memory_space<vmem>>, %arg7: memref<1x120xf32, #tpu.memory_space<vmem>>, %arg8: memref<120x84xf32, #tpu.memory_space<vmem>>, %arg9: memref<1x84xf32, #tpu.memory_space<vmem>>, %arg10: memref<84x128xf32, #tpu.memory_space<vmem>>, %arg11: memref<1x128xf32, #tpu.memory_space<vmem>>, %arg12: memref<8x128xf32, #tpu.memory_space<vmem>>) attributes {dimension_semantics = [#tpu.dimension_semantics<parallel>], iteration_bounds = array<i64: 1>, scalar_prefetch = 0 : i64, scratch_operands = 0 : i64, tpu.core_type = #tpu.core_type<tc>, window_params = [{transform_indices = @transform_0, window_bounds = array<i64: 8, 256>}, {pipeline_mode = #tpu.pipeline_mode<synchronous>, transform_indices = @transform_1, window_bounds = array<i64: 256, 1536>}, {pipeline_mode = #tpu.pipeline_mode<synchronous>, transform_indices = @transform_2, window_bounds = array<i64: 1, 1536>}, {pipeline_mode = #tpu.pipeline_mode<synchronous>, transform_indices = @transform_3, window_bounds = array<i64: 384, 512>}, {pipeline_mode = #tpu.pipeline_mode<synchronous>, transform_indices = @transform_4, window_bounds = array<i64: 1, 512>}, {pipeline_mode = #tpu.pipeline_mode<synchronous>, transform_indices = @transform_5, window_bounds = array<i64: 128, 120>}, {pipeline_mode = #tpu.pipeline_mode<synchronous>, transform_indices = @transform_6, window_bounds = array<i64: 1, 120>}, {pipeline_mode = #tpu.pipeline_mode<synchronous>, transform_indices = @transform_7, window_bounds = array<i64: 120, 84>}, {pipeline_mode = #tpu.pipeline_mode<synchronous>, transform_indices = @transform_8, window_bounds = array<i64: 1, 84>}, {pipeline_mode = #tpu.pipeline_mode<synchronous>, transform_indices = @transform_9, window_bounds = array<i64: 84, 128>}, {pipeline_mode = #tpu.pipeline_mode<synchronous>, transform_indices = @transform_10, window_bounds = array<i64: 1, 128>}, {transform_indices = @transform_11, window_bounds = array<i64: 8, 128>}]} {
    %c0 = arith.constant 0 : index
    %c0_0 = arith.constant 0 : index
    %0 = vector.load %arg1[%c0, %c0_0] : memref<8x256xf32, #tpu.memory_space<vmem>>, vector<8x256xf32>
    %c0_1 = arith.constant 0 : index
    %c0_2 = arith.constant 0 : index
    %1 = vector.load %arg2[%c0_1, %c0_2] : memref<256x1536xf32, #tpu.memory_space<vmem>>, vector<256x1536xf32>
    %cst = arith.constant dense<0.000000e+00> : vector<8x1536xf32>
    %2 = tpu.matmul %0, %1, %cst {dimension_numbers = #tpu.dot_dimension_numbers<[1], [0], [0], [1], [0, 0, 1, 1], [], []>} : vector<8x256xf32>, vector<256x1536xf32>, vector<8x1536xf32> -> vector<8x1536xf32>
    %c0_3 = arith.constant 0 : index
    %c0_4 = arith.constant 0 : index
    %3 = vector.load %arg3[%c0_3, %c0_4] : memref<1x1536xf32, #tpu.memory_space<vmem>>, vector<1x1536xf32>
    %4 = vector.broadcast %3 : vector<1x1536xf32> to vector<8x1536xf32>
    %5 = arith.addf %2, %4 : vector<8x1536xf32>
    %6 = vector.extract_strided_slice %5 {offsets = [0, 0], sizes = [8, 384], strides = [1, 1]} : vector<8x1536xf32> to vector<8x384xf32>
    %7 = vector.extract_strided_slice %5 {offsets = [0, 384], sizes = [8, 384], strides = [1, 1]} : vector<8x1536xf32> to vector<8x384xf32>
    %8 = arith.maximumf %6, %7 : vector<8x384xf32>
    %9 = vector.extract_strided_slice %5 {offsets = [0, 768], sizes = [8, 384], strides = [1, 1]} : vector<8x1536xf32> to vector<8x384xf32>
    %10 = vector.extract_strided_slice %5 {offsets = [0, 1152], sizes = [8, 384], strides = [1, 1]} : vector<8x1536xf32> to vector<8x384xf32>
    %11 = arith.maximumf %9, %10 : vector<8x384xf32>
    %12 = arith.maximumf %8, %11 : vector<8x384xf32>
    %cst_5 = arith.constant 0.000000e+00 : f32
    %13 = vector.broadcast %cst_5 : f32 to vector<8x384xf32>
    %14 = arith.maximumf %12, %13 : vector<8x384xf32>
    %c0_6 = arith.constant 0 : index
    %c0_7 = arith.constant 0 : index
    %15 = vector.load %arg4[%c0_6, %c0_7] : memref<384x512xf32, #tpu.memory_space<vmem>>, vector<384x512xf32>
    %cst_8 = arith.constant dense<0.000000e+00> : vector<8x512xf32>
    %16 = tpu.matmul %14, %15, %cst_8 {dimension_numbers = #tpu.dot_dimension_numbers<[1], [0], [0], [1], [0, 0, 1, 1], [], []>} : vector<8x384xf32>, vector<384x512xf32>, vector<8x512xf32> -> vector<8x512xf32>
    %c0_9 = arith.constant 0 : index
    %c0_10 = arith.constant 0 : index
    %17 = vector.load %arg5[%c0_9, %c0_10] : memref<1x512xf32, #tpu.memory_space<vmem>>, vector<1x512xf32>
    %18 = vector.broadcast %17 : vector<1x512xf32> to vector<8x512xf32>
    %19 = arith.addf %16, %18 : vector<8x512xf32>
    %20 = vector.extract_strided_slice %19 {offsets = [0, 0], sizes = [8, 128], strides = [1, 1]} : vector<8x512xf32> to vector<8x128xf32>
    %21 = vector.extract_strided_slice %19 {offsets = [0, 128], sizes = [8, 128], strides = [1, 1]} : vector<8x512xf32> to vector<8x128xf32>
    %22 = arith.maximumf %20, %21 : vector<8x128xf32>
    %23 = vector.extract_strided_slice %19 {offsets = [0, 256], sizes = [8, 128], strides = [1, 1]} : vector<8x512xf32> to vector<8x128xf32>
    %24 = vector.extract_strided_slice %19 {offsets = [0, 384], sizes = [8, 128], strides = [1, 1]} : vector<8x512xf32> to vector<8x128xf32>
    %25 = arith.maximumf %23, %24 : vector<8x128xf32>
    %26 = arith.maximumf %22, %25 : vector<8x128xf32>
    %cst_11 = arith.constant 0.000000e+00 : f32
    %27 = vector.broadcast %cst_11 : f32 to vector<8x128xf32>
    %28 = arith.maximumf %26, %27 : vector<8x128xf32>
    %c0_12 = arith.constant 0 : index
    %c0_13 = arith.constant 0 : index
    %29 = vector.load %arg6[%c0_12, %c0_13] : memref<128x120xf32, #tpu.memory_space<vmem>>, vector<128x120xf32>
    %cst_14 = arith.constant dense<0.000000e+00> : vector<8x120xf32>
    %30 = tpu.matmul %28, %29, %cst_14 {dimension_numbers = #tpu.dot_dimension_numbers<[1], [0], [0], [1], [0, 0, 1, 1], [], []>} : vector<8x128xf32>, vector<128x120xf32>, vector<8x120xf32> -> vector<8x120xf32>
    %c0_15 = arith.constant 0 : index
    %c0_16 = arith.constant 0 : index
    %31 = vector.load %arg7[%c0_15, %c0_16] : memref<1x120xf32, #tpu.memory_space<vmem>>, vector<1x120xf32>
    %32 = vector.broadcast %31 : vector<1x120xf32> to vector<8x120xf32>
    %33 = arith.addf %30, %32 : vector<8x120xf32>
    %cst_17 = arith.constant 0.000000e+00 : f32
    %34 = vector.broadcast %cst_17 : f32 to vector<8x120xf32>
    %35 = arith.maximumf %33, %34 : vector<8x120xf32>
    %c0_18 = arith.constant 0 : index
    %c0_19 = arith.constant 0 : index
    %36 = vector.load %arg8[%c0_18, %c0_19] : memref<120x84xf32, #tpu.memory_space<vmem>>, vector<120x84xf32>
    %cst_20 = arith.constant dense<0.000000e+00> : vector<8x84xf32>
    %37 = tpu.matmul %35, %36, %cst_20 {dimension_numbers = #tpu.dot_dimension_numbers<[1], [0], [0], [1], [0, 0, 1, 1], [], []>} : vector<8x120xf32>, vector<120x84xf32>, vector<8x84xf32> -> vector<8x84xf32>
    %c0_21 = arith.constant 0 : index
    %c0_22 = arith.constant 0 : index
    %38 = vector.load %arg9[%c0_21, %c0_22] : memref<1x84xf32, #tpu.memory_space<vmem>>, vector<1x84xf32>
    %39 = vector.broadcast %38 : vector<1x84xf32> to vector<8x84xf32>
    %40 = arith.addf %37, %39 : vector<8x84xf32>
    %cst_23 = arith.constant 0.000000e+00 : f32
    %41 = vector.broadcast %cst_23 : f32 to vector<8x84xf32>
    %42 = arith.maximumf %40, %41 : vector<8x84xf32>
    %c0_24 = arith.constant 0 : index
    %c0_25 = arith.constant 0 : index
    %43 = vector.load %arg10[%c0_24, %c0_25] : memref<84x128xf32, #tpu.memory_space<vmem>>, vector<84x128xf32>
    %cst_26 = arith.constant dense<0.000000e+00> : vector<8x128xf32>
    %44 = tpu.matmul %42, %43, %cst_26 {dimension_numbers = #tpu.dot_dimension_numbers<[1], [0], [0], [1], [0, 0, 1, 1], [], []>} : vector<8x84xf32>, vector<84x128xf32>, vector<8x128xf32> -> vector<8x128xf32>
    %c0_27 = arith.constant 0 : index
    %c0_28 = arith.constant 0 : index
    %45 = vector.load %arg11[%c0_27, %c0_28] : memref<1x128xf32, #tpu.memory_space<vmem>>, vector<1x128xf32>
    %46 = vector.broadcast %45 : vector<1x128xf32> to vector<8x128xf32>
    %47 = arith.addf %44, %46 : vector<8x128xf32>
    %c0_29 = arith.constant 0 : index
    %c0_30 = arith.constant 0 : index
    %48 = vector.load %arg12[%c0_29, %c0_30] : memref<8x128xf32, #tpu.memory_space<vmem>>, vector<8x128xf32>
    tpu.vector_store %arg12[%c0_29, %c0_30], %47 {strides = array<i32>} : memref<8x128xf32, #tpu.memory_space<vmem>>, vector<8x128xf32>,
    return
  }
  func.func @transform_0(%arg0: i32) -> (i32, i32) {
    %c0_i32 = arith.constant 0 : i32
    %c0_i32_0 = arith.constant 0 : i32
    return %arg0, %c0_i32 : i32, i32
  }
  func.func @transform_1(%arg0: i32) -> (i32, i32) {
    %c0_i32 = arith.constant 0 : i32
    %c0_i32_0 = arith.constant 0 : i32
    %c0_i32_1 = arith.constant 0 : i32
    return %c0_i32, %c0_i32_0 : i32, i32
  }
  func.func @transform_2(%arg0: i32) -> (i32, i32) {
    %c0_i32 = arith.constant 0 : i32
    %c0_i32_0 = arith.constant 0 : i32
    %c0_i32_1 = arith.constant 0 : i32
    return %c0_i32, %c0_i32_0 : i32, i32
  }
  func.func @transform_3(%arg0: i32) -> (i32, i32) {
    %c0_i32 = arith.constant 0 : i32
    %c0_i32_0 = arith.constant 0 : i32
    %c0_i32_1 = arith.constant 0 : i32
    return %c0_i32, %c0_i32_0 : i32, i32
  }
  func.func @transform_4(%arg0: i32) -> (i32, i32) {
    %c0_i32 = arith.constant 0 : i32
    %c0_i32_0 = arith.constant 0 : i32
    %c0_i32_1 = arith.constant 0 : i32
    return %c0_i32, %c0_i32_0 : i32, i32
  }
  func.func @transform_5(%arg0: i32) -> (i32, i32) {
    %c0_i32 = arith.constant 0 : i32
    %c0_i32_0 = arith.constant 0 : i32
    %c0_i32_1 = arith.constant 0 : i32
    return %c0_i32, %c0_i32_0 : i32, i32
  }
  func.func @transform_6(%arg0: i32) -> (i32, i32) {
    %c0_i32 = arith.constant 0 : i32
    %c0_i32_0 = arith.constant 0 : i32
    %c0_i32_1 = arith.constant 0 : i32
    return %c0_i32, %c0_i32_0 : i32, i32
  }
  func.func @transform_7(%arg0: i32) -> (i32, i32) {
    %c0_i32 = arith.constant 0 : i32
    %c0_i32_0 = arith.constant 0 : i32
    %c0_i32_1 = arith.constant 0 : i32
    return %c0_i32, %c0_i32_0 : i32, i32
  }
  func.func @transform_8(%arg0: i32) -> (i32, i32) {
    %c0_i32 = arith.constant 0 : i32
    %c0_i32_0 = arith.constant 0 : i32
    %c0_i32_1 = arith.constant 0 : i32
    return %c0_i32, %c0_i32_0 : i32, i32
  }
  func.func @transform_9(%arg0: i32) -> (i32, i32) {
    %c0_i32 = arith.constant 0 : i32
    %c0_i32_0 = arith.constant 0 : i32
    %c0_i32_1 = arith.constant 0 : i32
    return %c0_i32, %c0_i32_0 : i32, i32
  }
  func.func @transform_10(%arg0: i32) -> (i32, i32) {
    %c0_i32 = arith.constant 0 : i32
    %c0_i32_0 = arith.constant 0 : i32
    %c0_i32_1 = arith.constant 0 : i32
    return %c0_i32, %c0_i32_0 : i32, i32
  }
  func.func @transform_11(%arg0: i32) -> (i32, i32) {
    %c0_i32 = arith.constant 0 : i32
    %c0_i32_0 = arith.constant 0 : i32
    return %arg0, %c0_i32 : i32, i32
  }
}

</mosaic_0001>

<bundles_post_ra>
// kernel: tile.17
= control target key start
LH: loop header
LB: loop body
LE: loop exit
PB: predicated region body
PF: predicated region fallthrough
CT: control target
= control target key end

     0   :  { %s67_s10 = smov 112   ;;  %s68_s11 = smov 80   ;;  %vm3_vm0 = vcmask 130048   ;;  %vm9_vm1 = vcmask 1048448   ;;  %vm15_vm2 = vcmask 917248   ;;  %vm21_vm3 = vcmask 786048   ;;  %s111_s0 = inlined_call_operand.vmem [shape: f32[8,16], index: 0, kind: input, shape index: {}]   ;;  %s112_s1 = inlined_call_operand.vmem [shape: f32[128], index: 1, kind: output, shape index: {}]  }
   0x1   :  { %v53_v0 = vld [vmem:[%s111_s0 + $0x7] sm:$0x1]   ;;  %v55_v1 = vld [vmem:[%s111_s0 + $0x5] sm:$0x1]   ;;  %v57_v2 = vld [vmem:[%s111_s0 + $0x3] sm:$0x1]  }
   0x2   :  { %7 = vrot.lane.b32.xlu0 %v53_v0, %s67_s10  ;;  %19 = vrot.lane.b32.xlu1 %v55_v1, %s68_s11  ;;  %s69_s14 = smov 48   ;;  %v54_v3 = vld [vmem:[%s111_s0 + $0x6] sm:$0x1]   ;;  %v56_v4 = vld [vmem:[%s111_s0 + $0x4] sm:$0x1]   ;;  %s70_s21 = smov 96  }
   0x3   :  { %31 = vrot.lane.b32.xlu2 %v57_v2, %s69_s14  ;;  %v58_v5 = vld [vmem:[%s111_s0 + $0x2] sm:$0x1]   ;;  %s71_s22 = smov 64   ;;  %s72_s23 = smov 32   ;;  %v59_v6 = vld [vmem:[%s111_s0 + $0x1] sm:$0x1]  }
   0x4   :  { %s73_s26 = smov 16   ;;  %v2_v7 = vld [vmem:[%s111_s0] sm:$0x1]   ;;  %vm27_vm4 = vcmask 654848   ;;  %vm33_vm5 = vcmask 523648   ;;  %vm39_vm6 = vcmask 392448  }
   0x5   :  { %4 = vst.msk [vmem:[#allocation0] sm:$0x1] %vm3_vm0, %v2_v7   ;;  %vm45_vm7 = vcmask 261248  }
   0xa   :  { %13 = vrot.lane.b32.xlu0 %v54_v3, %s70_s21  ;;  %25 = vrot.lane.b32.xlu1 %v56_v4, %s71_s22 }
   0xb   :  { %37 = vrot.lane.b32.xlu2 %v58_v5, %s72_s23 }
  0x12   :  { %43 = vrot.lane.b32.xlu0 %v59_v6, %s73_s26 }
  0x5d   :  { %v32_v8 = vpop.permute.xlu2 %31  }
  0x65   :  { %v38_v9 = vpop.permute.xlu2 %37  }
  0x74   :  { %v8_v10 = vpop.permute.xlu0 %7   ;;  %v20_v11 = vpop.permute.xlu1 %19  }
  0x75   :  { %10 = vst.msk [vmem:[#allocation0] sm:$0x1] %vm9_vm1, %v8_v10  }
  0x7c   :  { %v14_v12 = vpop.permute.xlu0 %13   ;;  %v26_v13 = vpop.permute.xlu1 %25  }
  0x7d   :  { %16 = vst.msk [vmem:[#allocation0] sm:$0x1] %vm15_vm2, %v14_v12  }
  0x7e   :  { %22 = vst.msk [vmem:[#allocation0] sm:$0x1] %vm21_vm3, %v20_v11  }
  0x7f   :  { %28 = vst.msk [vmem:[#allocation0] sm:$0x1] %vm27_vm4, %v26_v13  }
  0x80   :  { %34 = vst.msk [vmem:[#allocation0] sm:$0x1] %vm33_vm5, %v32_v8  }
  0x81   :  { %40 = vst.msk [vmem:[#allocation0] sm:$0x1] %vm39_vm6, %v38_v9  }
  0x84   :  { %v44_v14 = vpop.permute.xlu0 %43  }
  0x85   :  { %46 = vst.msk [vmem:[#allocation0] sm:$0x1] %vm45_vm7, %v44_v14  }
  0x8c   :  { %v49_v15 = vld [vmem:[#allocation0] sm:$0x1] }
  0x8d   :  { %52 = vst [vmem:[%s112_s1] sm:$0x1] %v49_v15 }

// kernel: tile.18
= control target key start
LH: loop header
LB: loop body
LE: loop exit
PB: predicated region body
PF: predicated region fallthrough
CT: control target
= control target key end

     0   :  { %s22_s0 = inlined_call_operand.vmem [shape: f32[128], index: 0, kind: input, shape index: {}]   ;;  %s23_s1 = inlined_call_operand.vmem [shape: f32[4,128], index: 1, kind: output, shape index: {}]  }
   0x1   :  { %v4_v0 = vld [vmem:[%s22_s0] ss:$0 sm:$0xff] }
   0x2   :  { %5 = vst [vmem:[%s23_s1] sm:$0xf] %v4_v0 }

// kernel: pallas_net_forward.1
= control target key start
LH: loop header
LB: loop body
LE: loop exit
PB: predicated region body
PF: predicated region fallthrough
CT: control target
= control target key end

     0   :  { %vm1494_vm0 = vcmask 1043456   ;;  %vm1450_vm1 = vcmask 982016   ;;  %vm1490_vm2 = vcmask 687104   ;;  %s3570_s1 = inlined_call_operand.vmem [shape: f32[256,1536], index: 1, kind: input, shape index: {}]   ;;  %s3571_s0 = inlined_call_operand.vmem [shape: f32[8,256], index: 0, kind: input, shape index: {}]   ;;  %s3572_s3 = inlined_call_operand.vmem [shape: f32[384,512], index: 3, kind: input, shape index: {}]   ;;  %s3573_s2 = inlined_call_operand.vmem [shape: f32[1,1536], index: 2, kind: input, shape index: {}]   ;;  %s3574_s6 = inlined_call_operand.vmem [shape: f32[1,120], index: 6, kind: input, shape index: {}]   ;;  %s3575_s5 = inlined_call_operand.vmem [shape: f32[128,120], index: 5, kind: input, shape index: {}]   ;;  %s3576_s7 = inlined_call_operand.vmem [shape: f32[120,84], index: 7, kind: input, shape index: {}]   ;;  %s3577_s4 = inlined_call_operand.vmem [shape: f32[1,512], index: 4, kind: input, shape index: {}]   ;;  %s3578_s8 = inlined_call_operand.vmem [shape: f32[1,84], index: 8, kind: input, shape index: {}]   ;;  %s3579_s9 = inlined_call_operand.vmem [shape: f32[84,128], index: 9, kind: input, shape index: {}]   ;;  %s3580_s10 = inlined_call_operand.vmem [shape: f32[1,128], index: 10, kind: input, shape index: {}]   ;;  %s3581_s11 = inlined_call_operand.vmem [shape: f32[8,128], index: 11, kind: output, shape index: {}]  }
   0x1   :  { %v220_v0 = vld [vmem:[%s3570_s1 + $0x5a0] sm:$0xff]  ;;  %v221_v1 = vld [vmem:[%s3570_s1 + $0x5a8] sm:$0xff]  ;;  %v222_v62 = vld [vmem:[%s3570_s1 + $0x5b0] sm:$0xff] }
   0x2   :  { %v208_v2 = vld [vmem:[%s3570_s1 + $0x540] sm:$0xff]  ;;  %452 = vmatpush.msra.mxu0 %v220_v0  ;;  %492 = vmatpush.msra.mxu2 %v221_v1  ;;  %v209_v4 = vld [vmem:[%s3570_s1 + $0x548] sm:$0xff]  ;;  %v223_v63 = vld [vmem:[%s3570_s1 + $0x5b8] sm:$0xff] }
   0x3   :  { %v412_v3 = vld [vmem:[%s3570_s1 + $0xba0] sm:$0xff]  ;;  %v413_v5 = vld [vmem:[%s3570_s1 + $0xba8] sm:$0xff] }
   0x4   :  { %472 = vmatpush.msra.mxu1 %v412_v3  ;;  %512 = vmatpush.msra.mxu3 %v413_v5  ;;  %v196_v6 = vld [vmem:[%s3570_s1 + $0x4e0] sm:$0xff]  ;;  %v197_v8 = vld [vmem:[%s3570_s1 + $0x4e8] sm:$0xff]  ;;  %v414_v3 = vld [vmem:[%s3570_s1 + $0xbb0] sm:$0xff] }
   0x5   :  { %v400_v7 = vld [vmem:[%s3570_s1 + $0xb40] sm:$0xff]  ;;  %453 = vmatpush.msra.mxu0 %v208_v2  ;;  %493 = vmatpush.msra.mxu2 %v209_v4  ;;  %v401_v9 = vld [vmem:[%s3570_s1 + $0xb48] sm:$0xff]  ;;  %v210_v2 = vld [vmem:[%s3570_s1 + $0x550] sm:$0xff] }
   0x6   :  { %v388_v10 = vld [vmem:[%s3570_s1 + $0xae0] sm:$0xff]  ;;  %473 = vmatpush.msra.mxu1 %v400_v7  ;;  %513 = vmatpush.msra.mxu3 %v401_v9  ;;  %v185_v12 = vld [vmem:[%s3570_s1 + $0x488] sm:$0xff]  ;;  %v211_v4 = vld [vmem:[%s3570_s1 + $0x558] sm:$0xff] }
   0x7   :  { %v184_v11 = vld [vmem:[%s3570_s1 + $0x480] sm:$0xff]  ;;  %v389_v13 = vld [vmem:[%s3570_s1 + $0xae8] sm:$0xff]  ;;  %454 = vmatpush.msra.mxu0 %v196_v6  ;;  %494 = vmatpush.msra.mxu2 %v197_v8  ;;  %v415_v5 = vld [vmem:[%s3570_s1 + $0xbb8] sm:$0xff] }
   0x8   :  { %v376_v14 = vld [vmem:[%s3570_s1 + $0xa80] sm:$0xff]  ;;  %v377_v15 = vld [vmem:[%s3570_s1 + $0xa88] sm:$0xff]  ;;  %474 = vmatpush.msra.mxu1 %v388_v10  ;;  %514 = vmatpush.msra.mxu3 %v389_v13  ;;  %v198_v6 = vld [vmem:[%s3570_s1 + $0x4f0] sm:$0xff] }
   0x9   :  { %v172_v16 = vld [vmem:[%s3570_s1 + $0x420] sm:$0xff]  ;;  %v173_v17 = vld [vmem:[%s3570_s1 + $0x428] sm:$0xff]  ;;  %455 = vmatpush.msra.mxu0 %v184_v11  ;;  %495 = vmatpush.msra.mxu2 %v185_v12  ;;  %v402_v7 = vld [vmem:[%s3570_s1 + $0xb50] sm:$0xff] }
   0xa   :  { %v364_v18 = vld [vmem:[%s3570_s1 + $0xa20] sm:$0xff]  ;;  %v365_v19 = vld [vmem:[%s3570_s1 + $0xa28] sm:$0xff]  ;;  %475 = vmatpush.msra.mxu1 %v376_v14  ;;  %515 = vmatpush.msra.mxu3 %v377_v15  ;;  %v199_v8 = vld [vmem:[%s3570_s1 + $0x4f8] sm:$0xff] }
   0xb   :  { %v160_v20 = vld [vmem:[%s3570_s1 + $0x3c0] sm:$0xff]  ;;  %v161_v21 = vld [vmem:[%s3570_s1 + $0x3c8] sm:$0xff]  ;;  %456 = vmatpush.msra.mxu0 %v172_v16  ;;  %496 = vmatpush.msra.mxu2 %v173_v17  ;;  %v403_v9 = vld [vmem:[%s3570_s1 + $0xb58] sm:$0xff] }
   0xc   :  { %v352_v22 = vld [vmem:[%s3570_s1 + $0x9c0] sm:$0xff]  ;;  %v353_v23 = vld [vmem:[%s3570_s1 + $0x9c8] sm:$0xff]  ;;  %476 = vmatpush.msra.mxu1 %v364_v18  ;;  %516 = vmatpush.msra.mxu3 %v365_v19  ;;  %v186_v10 = vld [vmem:[%s3570_s1 + $0x490] sm:$0xff] }
   0xd   :  { %v148_v24 = vld [vmem:[%s3570_s1 + $0x360] sm:$0xff]  ;;  %v149_v25 = vld [vmem:[%s3570_s1 + $0x368] sm:$0xff]  ;;  %457 = vmatpush.msra.mxu0 %v160_v20  ;;  %497 = vmatpush.msra.mxu2 %v161_v21  ;;  %v390_v11 = vld [vmem:[%s3570_s1 + $0xaf0] sm:$0xff] }
   0xe   :  { %v340_v26 = vld [vmem:[%s3570_s1 + $0x960] sm:$0xff]  ;;  %v341_v27 = vld [vmem:[%s3570_s1 + $0x968] sm:$0xff]  ;;  %477 = vmatpush.msra.mxu1 %v352_v22  ;;  %517 = vmatpush.msra.mxu3 %v353_v23  ;;  %v187_v12 = vld [vmem:[%s3570_s1 + $0x498] sm:$0xff] }
   0xf   :  { %v136_v28 = vld [vmem:[%s3570_s1 + $0x300] sm:$0xff]  ;;  %v137_v29 = vld [vmem:[%s3570_s1 + $0x308] sm:$0xff]  ;;  %458 = vmatpush.msra.mxu0 %v148_v24  ;;  %498 = vmatpush.msra.mxu2 %v149_v25  ;;  %v391_v13 = vld [vmem:[%s3570_s1 + $0xaf8] sm:$0xff] }
  0x10   :  { %v328_v30 = vld [vmem:[%s3570_s1 + $0x900] sm:$0xff]  ;;  %v329_v31 = vld [vmem:[%s3570_s1 + $0x908] sm:$0xff]  ;;  %478 = vmatpush.msra.mxu1 %v340_v26  ;;  %518 = vmatpush.msra.mxu3 %v341_v27  ;;  %v174_v14 = vld [vmem:[%s3570_s1 + $0x430] sm:$0xff] }
  0x11   :  { %v124_v32 = vld [vmem:[%s3570_s1 + $0x2a0] sm:$0xff]  ;;  %v125_v33 = vld [vmem:[%s3570_s1 + $0x2a8] sm:$0xff]  ;;  %459 = vmatpush.msra.mxu0 %v136_v28  ;;  %499 = vmatpush.msra.mxu2 %v137_v29  ;;  %v378_v15 = vld [vmem:[%s3570_s1 + $0xa90] sm:$0xff] }
  0x12   :  { %v316_v34 = vld [vmem:[%s3570_s1 + $0x8a0] sm:$0xff]  ;;  %v317_v35 = vld [vmem:[%s3570_s1 + $0x8a8] sm:$0xff]  ;;  %479 = vmatpush.msra.mxu1 %v328_v30  ;;  %519 = vmatpush.msra.mxu3 %v329_v31  ;;  %v175_v16 = vld [vmem:[%s3570_s1 + $0x438] sm:$0xff] }
  0x13   :  { %v112_v36 = vld [vmem:[%s3570_s1 + $0x240] sm:$0xff]  ;;  %v113_v37 = vld [vmem:[%s3570_s1 + $0x248] sm:$0xff]  ;;  %460 = vmatpush.msra.mxu0 %v124_v32  ;;  %500 = vmatpush.msra.mxu2 %v125_v33  ;;  %v379_v17 = vld [vmem:[%s3570_s1 + $0xa98] sm:$0xff] }
  0x14   :  { %v304_v38 = vld [vmem:[%s3570_s1 + $0x840] sm:$0xff]  ;;  %v305_v39 = vld [vmem:[%s3570_s1 + $0x848] sm:$0xff]  ;;  %480 = vmatpush.msra.mxu1 %v316_v34  ;;  %520 = vmatpush.msra.mxu3 %v317_v35  ;;  %v162_v18 = vld [vmem:[%s3570_s1 + $0x3d0] sm:$0xff] }
  0x15   :  { %v100_v40 = vld [vmem:[%s3570_s1 + $0x1e0] sm:$0xff]  ;;  %v101_v41 = vld [vmem:[%s3570_s1 + $0x1e8] sm:$0xff]  ;;  %461 = vmatpush.msra.mxu0 %v112_v36  ;;  %501 = vmatpush.msra.mxu2 %v113_v37  ;;  %v366_v19 = vld [vmem:[%s3570_s1 + $0xa30] sm:$0xff] }
  0x16   :  { %v292_v42 = vld [vmem:[%s3570_s1 + $0x7e0] sm:$0xff]  ;;  %v293_v43 = vld [vmem:[%s3570_s1 + $0x7e8] sm:$0xff]  ;;  %481 = vmatpush.msra.mxu1 %v304_v38  ;;  %521 = vmatpush.msra.mxu3 %v305_v39  ;;  %v163_v20 = vld [vmem:[%s3570_s1 + $0x3d8] sm:$0xff] }
  0x17   :  { %v88_v44 = vld [vmem:[%s3570_s1 + $0x180] sm:$0xff]  ;;  %v89_v45 = vld [vmem:[%s3570_s1 + $0x188] sm:$0xff]  ;;  %462 = vmatpush.msra.mxu0 %v100_v40  ;;  %502 = vmatpush.msra.mxu2 %v101_v41  ;;  %v367_v21 = vld [vmem:[%s3570_s1 + $0xa38] sm:$0xff] }
  0x18   :  { %v280_v46 = vld [vmem:[%s3570_s1 + $0x780] sm:$0xff]  ;;  %v281_v47 = vld [vmem:[%s3570_s1 + $0x788] sm:$0xff]  ;;  %482 = vmatpush.msra.mxu1 %v292_v42  ;;  %522 = vmatpush.msra.mxu3 %v293_v43  ;;  %v150_v22 = vld [vmem:[%s3570_s1 + $0x370] sm:$0xff] }
  0x19   :  { %v76_v48 = vld [vmem:[%s3570_s1 + $0x120] sm:$0xff]  ;;  %v77_v49 = vld [vmem:[%s3570_s1 + $0x128] sm:$0xff]  ;;  %463 = vmatpush.msra.mxu0 %v88_v44  ;;  %503 = vmatpush.msra.mxu2 %v89_v45  ;;  %v354_v23 = vld [vmem:[%s3570_s1 + $0x9d0] sm:$0xff] }
  0x1a   :  { %v268_v50 = vld [vmem:[%s3570_s1 + $0x720] sm:$0xff]  ;;  %v269_v51 = vld [vmem:[%s3570_s1 + $0x728] sm:$0xff]  ;;  %483 = vmatpush.msra.mxu1 %v280_v46  ;;  %523 = vmatpush.msra.mxu3 %v281_v47  ;;  %v151_v24 = vld [vmem:[%s3570_s1 + $0x378] sm:$0xff] }
  0x1b   :  { %v64_v52 = vld [vmem:[%s3570_s1 + $0xc0] sm:$0xff]  ;;  %v65_v53 = vld [vmem:[%s3570_s1 + $0xc8] sm:$0xff]  ;;  %464 = vmatpush.msra.mxu0 %v76_v48  ;;  %504 = vmatpush.msra.mxu2 %v77_v49  ;;  %v355_v25 = vld [vmem:[%s3570_s1 + $0x9d8] sm:$0xff] }
  0x1c   :  { %v256_v54 = vld [vmem:[%s3570_s1 + $0x6c0] sm:$0xff]  ;;  %v257_v55 = vld [vmem:[%s3570_s1 + $0x6c8] sm:$0xff]  ;;  %484 = vmatpush.msra.mxu1 %v268_v50  ;;  %524 = vmatpush.msra.mxu3 %v269_v51  ;;  %v138_v26 = vld [vmem:[%s3570_s1 + $0x310] sm:$0xff] }
  0x1d   :  { %v52_v56 = vld [vmem:[%s3570_s1 + $0x60] sm:$0xff]  ;;  %v53_v57 = vld [vmem:[%s3570_s1 + $0x68] sm:$0xff]  ;;  %465 = vmatpush.msra.mxu0 %v64_v52  ;;  %505 = vmatpush.msra.mxu2 %v65_v53  ;;  %v342_v27 = vld [vmem:[%s3570_s1 + $0x970] sm:$0xff] }
  0x1e   :  { %v244_v58 = vld [vmem:[%s3570_s1 + $0x660] sm:$0xff]  ;;  %v245_v59 = vld [vmem:[%s3570_s1 + $0x668] sm:$0xff]  ;;  %485 = vmatpush.msra.mxu1 %v256_v54  ;;  %525 = vmatpush.msra.mxu3 %v257_v55  ;;  %v139_v28 = vld [vmem:[%s3570_s1 + $0x318] sm:$0xff] }
  0x1f   :  { %v40_v60 = vld [vmem:[%s3570_s1] sm:$0xff]  ;;  %v41_v61 = vld [vmem:[%s3570_s1 + $0x8] sm:$0xff]  ;;  %466 = vmatpush.msra.mxu0 %v52_v56  ;;  %506 = vmatpush.msra.mxu2 %v53_v57  ;;  %v343_v29 = vld [vmem:[%s3570_s1 + $0x978] sm:$0xff] }
  0x20   :  { %486 = vmatpush.msra.mxu1 %v244_v58  ;;  %526 = vmatpush.msra.mxu3 %v245_v59  ;;  %v232_v0 = vld [vmem:[%s3570_s1 + $0x600] sm:$0xff]  ;;  %v233_v1 = vld [vmem:[%s3570_s1 + $0x608] sm:$0xff]  ;;  %v126_v30 = vld [vmem:[%s3570_s1 + $0x2b0] sm:$0xff] }
  0x21   :  { %467 = vmatpush.msra.mxu0 %v40_v60  ;;  %507 = vmatpush.msra.mxu2 %v41_v61  ;;  %v330_v31 = vld [vmem:[%s3570_s1 + $0x910] sm:$0xff]  ;;  %v127_v32 = vld [vmem:[%s3570_s1 + $0x2b8] sm:$0xff]  ;;  %v1948_v54 = vld [vmem:[%s3571_s0] sm:$0xff] }
  0x22   :  { %487 = vmatpush.msra.mxu1 %v232_v0  ;;  %527 = vmatpush.msra.mxu3 %v233_v1  ;;  %v331_v33 = vld [vmem:[%s3570_s1 + $0x918] sm:$0xff]  ;;  %v114_v34 = vld [vmem:[%s3570_s1 + $0x250] sm:$0xff]  ;;  %v1969_v60 = vld [vmem:[%s3571_s0 + $0x8] sm:$0xff] }
  0x23   :  { %532 = vmatpush.msrb.mxu0 %v222_v62  ;;  %572 = vmatpush.msrb.mxu2 %v223_v63  ;;  %v318_v35 = vld [vmem:[%s3570_s1 + $0x8b0] sm:$0xff]  ;;  %v115_v36 = vld [vmem:[%s3570_s1 + $0x258] sm:$0xff]  ;;  %v225_v0 = vld [vmem:[%s3570_s1 + $0x5c8] sm:$0xff] }
  0x24   :  { %552 = vmatpush.msrb.mxu1 %v414_v3  ;;  %592 = vmatpush.msrb.mxu3 %v415_v5  ;;  %v319_v37 = vld [vmem:[%s3570_s1 + $0x8b8] sm:$0xff]  ;;  %v102_v38 = vld [vmem:[%s3570_s1 + $0x1f0] sm:$0xff]  ;;  %v224_v1 = vld [vmem:[%s3570_s1 + $0x5c0] sm:$0xff] }
  0x25   :  { %533 = vmatpush.msrb.mxu0 %v210_v2  ;;  %573 = vmatpush.msrb.mxu2 %v211_v4  ;;  %v306_v39 = vld [vmem:[%s3570_s1 + $0x850] sm:$0xff]  ;;  %v103_v40 = vld [vmem:[%s3570_s1 + $0x1f8] sm:$0xff]  ;;  %v212_v4 = vld [vmem:[%s3570_s1 + $0x560] sm:$0xff] }
  0x26   :  { %553 = vmatpush.msrb.mxu1 %v402_v7  ;;  %593 = vmatpush.msrb.mxu3 %v403_v9  ;;  %v307_v41 = vld [vmem:[%s3570_s1 + $0x858] sm:$0xff]  ;;  %v90_v42 = vld [vmem:[%s3570_s1 + $0x190] sm:$0xff]  ;;  %v416_v5 = vld [vmem:[%s3570_s1 + $0xbc0] sm:$0xff] }
  0x27   :  { %534 = vmatpush.msrb.mxu0 %v198_v6  ;;  %574 = vmatpush.msrb.mxu2 %v199_v8  ;;  %v294_v43 = vld [vmem:[%s3570_s1 + $0x7f0] sm:$0xff]  ;;  %v91_v44 = vld [vmem:[%s3570_s1 + $0x198] sm:$0xff]  ;;  %v213_v6 = vld [vmem:[%s3570_s1 + $0x568] sm:$0xff] }
  0x28   :  { %554 = vmatpush.msrb.mxu1 %v390_v11  ;;  %594 = vmatpush.msrb.mxu3 %v391_v13  ;;  %v295_v45 = vld [vmem:[%s3570_s1 + $0x7f8] sm:$0xff]  ;;  %v78_v46 = vld [vmem:[%s3570_s1 + $0x130] sm:$0xff]  ;;  %v417_v7 = vld [vmem:[%s3570_s1 + $0xbc8] sm:$0xff] }
  0x29   :  { %535 = vmatpush.msrb.mxu0 %v186_v10  ;;  %575 = vmatpush.msrb.mxu2 %v187_v12  ;;  %v282_v47 = vld [vmem:[%s3570_s1 + $0x790] sm:$0xff]  ;;  %v79_v48 = vld [vmem:[%s3570_s1 + $0x138] sm:$0xff]  ;;  %v200_v8 = vld [vmem:[%s3570_s1 + $0x500] sm:$0xff] }
  0x2a   :  { %555 = vmatpush.msrb.mxu1 %v378_v15  ;;  %595 = vmatpush.msrb.mxu3 %v379_v17  ;;  %v283_v49 = vld [vmem:[%s3570_s1 + $0x798] sm:$0xff]  ;;  %v66_v50 = vld [vmem:[%s3570_s1 + $0xd0] sm:$0xff]  ;;  %v404_v9 = vld [vmem:[%s3570_s1 + $0xb60] sm:$0xff] }
  0x2b   :  { %536 = vmatpush.msrb.mxu0 %v174_v14  ;;  %576 = vmatpush.msrb.mxu2 %v175_v16  ;;  %v270_v51 = vld [vmem:[%s3570_s1 + $0x730] sm:$0xff]  ;;  %v67_v52 = vld [vmem:[%s3570_s1 + $0xd8] sm:$0xff]  ;;  %v201_v10 = vld [vmem:[%s3570_s1 + $0x508] sm:$0xff] }
  0x2c   :  { %556 = vmatpush.msrb.mxu1 %v366_v19  ;;  %596 = vmatpush.msrb.mxu3 %v367_v21  ;;  %v271_v53 = vld [vmem:[%s3570_s1 + $0x738] sm:$0xff]  ;;  %v54_v55 = vld [vmem:[%s3570_s1 + $0x70] sm:$0xff]  ;;  %v405_v11 = vld [vmem:[%s3570_s1 + $0xb68] sm:$0xff] }
  0x2d   :  { %537 = vmatpush.msrb.mxu0 %v162_v18  ;;  %577 = vmatpush.msrb.mxu2 %v163_v20  ;;  %v258_v56 = vld [vmem:[%s3570_s1 + $0x6d0] sm:$0xff]  ;;  %v55_v57 = vld [vmem:[%s3570_s1 + $0x78] sm:$0xff]  ;;  %v188_v12 = vld [vmem:[%s3570_s1 + $0x4a0] sm:$0xff] }
  0x2e   :  { %557 = vmatpush.msrb.mxu1 %v354_v23  ;;  %597 = vmatpush.msrb.mxu3 %v355_v25  ;;  %v259_v58 = vld [vmem:[%s3570_s1 + $0x6d8] sm:$0xff]  ;;  %v42_v59 = vld [vmem:[%s3570_s1 + $0x10] sm:$0xff]  ;;  %v392_v13 = vld [vmem:[%s3570_s1 + $0xb00] sm:$0xff] }
  0x2f   :  { %538 = vmatpush.msrb.mxu0 %v150_v22  ;;  %578 = vmatpush.msrb.mxu2 %v151_v24  ;;  %v246_v61 = vld [vmem:[%s3570_s1 + $0x670] sm:$0xff]  ;;  %v43_v62 = vld [vmem:[%s3570_s1 + $0x18] sm:$0xff]  ;;  %v189_v14 = vld [vmem:[%s3570_s1 + $0x4a8] sm:$0xff] }
  0x30   :  { %558 = vmatpush.msrb.mxu1 %v342_v27  ;;  %598 = vmatpush.msrb.mxu3 %v343_v29  ;;  %v247_v63 = vld [vmem:[%s3570_s1 + $0x678] sm:$0xff]  ;;  %v234_v2 = vld [vmem:[%s3570_s1 + $0x610] sm:$0xff]  ;;  %v393_v15 = vld [vmem:[%s3570_s1 + $0xb08] sm:$0xff] }
  0x31   :  { %539 = vmatpush.msrb.mxu0 %v138_v26  ;;  %579 = vmatpush.msrb.mxu2 %v139_v28  ;;  %v235_v3 = vld [vmem:[%s3570_s1 + $0x618] sm:$0xff]  ;;  %v176_v16 = vld [vmem:[%s3570_s1 + $0x440] sm:$0xff]  ;;  %v177_v18 = vld [vmem:[%s3570_s1 + $0x448] sm:$0xff] }
  0x32   :  { %559 = vmatpush.msrb.mxu1 %v330_v31  ;;  %599 = vmatpush.msrb.mxu3 %v331_v33  ;;  %v380_v17 = vld [vmem:[%s3570_s1 + $0xaa0] sm:$0xff]  ;;  %v381_v19 = vld [vmem:[%s3570_s1 + $0xaa8] sm:$0xff] }
  0x33   :  { %540 = vmatpush.msrb.mxu0 %v126_v30  ;;  %580 = vmatpush.msrb.mxu2 %v127_v32  ;;  %v164_v20 = vld [vmem:[%s3570_s1 + $0x3e0] sm:$0xff]  ;;  %v165_v22 = vld [vmem:[%s3570_s1 + $0x3e8] sm:$0xff] }
  0x34   :  { %560 = vmatpush.msrb.mxu1 %v318_v35  ;;  %600 = vmatpush.msrb.mxu3 %v319_v37  ;;  %v368_v21 = vld [vmem:[%s3570_s1 + $0xa40] sm:$0xff]  ;;  %v369_v23 = vld [vmem:[%s3570_s1 + $0xa48] sm:$0xff] }
  0x35   :  { %541 = vmatpush.msrb.mxu0 %v114_v34  ;;  %581 = vmatpush.msrb.mxu2 %v115_v36  ;;  %v152_v24 = vld [vmem:[%s3570_s1 + $0x380] sm:$0xff]  ;;  %v153_v26 = vld [vmem:[%s3570_s1 + $0x388] sm:$0xff] }
  0x36   :  { %561 = vmatpush.msrb.mxu1 %v306_v39  ;;  %601 = vmatpush.msrb.mxu3 %v307_v41  ;;  %v356_v25 = vld [vmem:[%s3570_s1 + $0x9e0] sm:$0xff]  ;;  %v357_v27 = vld [vmem:[%s3570_s1 + $0x9e8] sm:$0xff] }
  0x37   :  { %542 = vmatpush.msrb.mxu0 %v102_v38  ;;  %582 = vmatpush.msrb.mxu2 %v103_v40  ;;  %v140_v28 = vld [vmem:[%s3570_s1 + $0x320] sm:$0xff]  ;;  %v141_v30 = vld [vmem:[%s3570_s1 + $0x328] sm:$0xff] }
  0x38   :  { %562 = vmatpush.msrb.mxu1 %v294_v43  ;;  %602 = vmatpush.msrb.mxu3 %v295_v45  ;;  %v344_v29 = vld [vmem:[%s3570_s1 + $0x980] sm:$0xff]  ;;  %v345_v31 = vld [vmem:[%s3570_s1 + $0x988] sm:$0xff] }
  0x39   :  { %543 = vmatpush.msrb.mxu0 %v90_v42  ;;  %583 = vmatpush.msrb.mxu2 %v91_v44  ;;  %v128_v32 = vld [vmem:[%s3570_s1 + $0x2c0] sm:$0xff]  ;;  %v129_v34 = vld [vmem:[%s3570_s1 + $0x2c8] sm:$0xff] }
  0x3a   :  { %563 = vmatpush.msrb.mxu1 %v282_v47  ;;  %603 = vmatpush.msrb.mxu3 %v283_v49  ;;  %v332_v33 = vld [vmem:[%s3570_s1 + $0x920] sm:$0xff]  ;;  %v333_v35 = vld [vmem:[%s3570_s1 + $0x928] sm:$0xff] }
  0x3b   :  { %544 = vmatpush.msrb.mxu0 %v78_v46  ;;  %584 = vmatpush.msrb.mxu2 %v79_v48  ;;  %v116_v36 = vld [vmem:[%s3570_s1 + $0x260] sm:$0xff]  ;;  %v117_v38 = vld [vmem:[%s3570_s1 + $0x268] sm:$0xff] }
  0x3c   :  { %564 = vmatpush.msrb.mxu1 %v270_v51  ;;  %604 = vmatpush.msrb.mxu3 %v271_v53  ;;  %v320_v37 = vld [vmem:[%s3570_s1 + $0x8c0] sm:$0xff]  ;;  %v321_v39 = vld [vmem:[%s3570_s1 + $0x8c8] sm:$0xff] }
  0x3d   :  { %545 = vmatpush.msrb.mxu0 %v66_v50  ;;  %585 = vmatpush.msrb.mxu2 %v67_v52  ;;  %v104_v40 = vld [vmem:[%s3570_s1 + $0x200] sm:$0xff]  ;;  %v105_v42 = vld [vmem:[%s3570_s1 + $0x208] sm:$0xff] }
  0x3e   :  { %508 = vmatmul.f32.vlgmr.msra.gmra.mxu2 %v1948_v54  ;;  %565 = vmatpush.msrb.mxu1 %v258_v56  ;;  %v308_v41 = vld [vmem:[%s3570_s1 + $0x860] sm:$0xff]  ;;  %v309_v43 = vld [vmem:[%s3570_s1 + $0x868] sm:$0xff] }
  0x3f   :  { %546 = vmatpush.msrb.mxu0 %v54_v55  ;;  %586 = vmatpush.msrb.mxu2 %v55_v57  ;;  %v92_v44 = vld [vmem:[%s3570_s1 + $0x1a0] sm:$0xff]  ;;  %v93_v46 = vld [vmem:[%s3570_s1 + $0x1a8] sm:$0xff] }
  0x40   :  { %605 = vmatpush.msrb.mxu3 %v259_v58  ;;  %566 = vmatpush.msrb.mxu1 %v246_v61  ;;  %v296_v45 = vld [vmem:[%s3570_s1 + $0x800] sm:$0xff]  ;;  %v297_v47 = vld [vmem:[%s3570_s1 + $0x808] sm:$0xff] }
  0x41   :  { %547 = vmatpush.msrb.mxu0 %v42_v59  ;;  %528 = vmatmul.f32.vlgmr.msra.gmra.mxu3 %v1969_v60  ;;  %v284_v48 = vld [vmem:[%s3570_s1 + $0x7a0] sm:$0xff]  ;;  %v81_v50 = vld [vmem:[%s3570_s1 + $0x148] sm:$0xff] }
  0x42   :  { %587 = vmatpush.msrb.mxu2 %v43_v62  ;;  %606 = vmatpush.msrb.mxu3 %v247_v63  ;;  %v80_v49 = vld [vmem:[%s3570_s1 + $0x140] sm:$0xff]  ;;  %v285_v51 = vld [vmem:[%s3570_s1 + $0x7a8] sm:$0xff] }
  0x43   :  { %468 = vmatmul.f32.vlgmr.msra.gmra.mxu0 %v1948_v54  ;;  %567 = vmatpush.msrb.mxu1 %v234_v2  ;;  %v68_v52 = vld [vmem:[%s3570_s1 + $0xe0] sm:$0xff]  ;;  %v69_v55 = vld [vmem:[%s3570_s1 + $0xe8] sm:$0xff]  ;;  %v227_v2 = vld [vmem:[%s3570_s1 + $0x5d8] sm:$0xff] }
  0x44   :  { %652 = vmatpush.msra.mxu2 %v225_v0  ;;  %612 = vmatpush.msra.mxu0 %v224_v1  ;;  %v272_v53 = vld [vmem:[%s3570_s1 + $0x740] sm:$0xff]  ;;  %v273_v56 = vld [vmem:[%s3570_s1 + $0x748] sm:$0xff] }
  0x45   :  { %607 = vmatpush.msrb.mxu3 %v235_v3  ;;  %488 = vmatmul.f32.vlgmr.msra.gmra.mxu1 %v1969_v60  ;;  %v56_v57 = vld [vmem:[%s3570_s1 + $0x80] sm:$0xff]  ;;  %v57_v59 = vld [vmem:[%s3570_s1 + $0x88] sm:$0xff]  ;;  %v226_v3 = vld [vmem:[%s3570_s1 + $0x5d0] sm:$0xff] }
  0x46   :  { %613 = vmatpush.msra.mxu0 %v212_v4  ;;  %632 = vmatpush.msra.mxu1 %v416_v5  ;;  %v260_v58 = vld [vmem:[%s3570_s1 + $0x6e0] sm:$0xff]  ;;  %v261_v61 = vld [vmem:[%s3570_s1 + $0x6e8] sm:$0xff] }
  0x47   :  { %653 = vmatpush.msra.mxu2 %v213_v6  ;;  %672 = vmatpush.msra.mxu3 %v417_v7  ;;  %v44_v62 = vld [vmem:[%s3570_s1 + $0x20] sm:$0xff]  ;;  %v45_v0 = vld [vmem:[%s3570_s1 + $0x28] sm:$0xff]  ;;  %v214_v6 = vld [vmem:[%s3570_s1 + $0x570] sm:$0xff] }
  0x48   :  { %588 = vmatmul.f32.vlgmr.msrb.gmra.mxu2 %v1948_v54  ;;  %614 = vmatpush.msra.mxu0 %v200_v8  ;;  %v248_v63 = vld [vmem:[%s3570_s1 + $0x680] sm:$0xff]  ;;  %v249_v1 = vld [vmem:[%s3570_s1 + $0x688] sm:$0xff]  ;;  %v418_v7 = vld [vmem:[%s3570_s1 + $0xbd0] sm:$0xff] }
  0x49   :  { %633 = vmatpush.msra.mxu1 %v404_v9  ;;  %654 = vmatpush.msra.mxu2 %v201_v10  ;;  %v236_v4 = vld [vmem:[%s3570_s1 + $0x620] sm:$0xff]  ;;  %v237_v5 = vld [vmem:[%s3570_s1 + $0x628] sm:$0xff]  ;;  %v215_v8 = vld [vmem:[%s3570_s1 + $0x578] sm:$0xff] }
  0x4a   :  { %673 = vmatpush.msra.mxu3 %v405_v11  ;;  %615 = vmatpush.msra.mxu0 %v188_v12  ;;  %v419_v9 = vld [vmem:[%s3570_s1 + $0xbd8] sm:$0xff]  ;;  %v202_v10 = vld [vmem:[%s3570_s1 + $0x510] sm:$0xff] }
  0x4b   :  { %608 = vmatmul.f32.vlgmr.msrb.gmra.mxu3 %v1969_v60  ;;  %634 = vmatpush.msra.mxu1 %v392_v13  ;;  %v406_v11 = vld [vmem:[%s3570_s1 + $0xb70] sm:$0xff]  ;;  %v203_v12 = vld [vmem:[%s3570_s1 + $0x518] sm:$0xff] }
  0x4c   :  { %655 = vmatpush.msra.mxu2 %v189_v14  ;;  %674 = vmatpush.msra.mxu3 %v393_v15  ;;  %v407_v13 = vld [vmem:[%s3570_s1 + $0xb78] sm:$0xff]  ;;  %v190_v14 = vld [vmem:[%s3570_s1 + $0x4b0] sm:$0xff] }
  0x4d   :  { %616 = vmatpush.msra.mxu0 %v176_v16  ;;  %635 = vmatpush.msra.mxu1 %v380_v17  ;;  %v394_v15 = vld [vmem:[%s3570_s1 + $0xb10] sm:$0xff]  ;;  %v191_v16 = vld [vmem:[%s3570_s1 + $0x4b8] sm:$0xff] }
  0x4e   :  { %656 = vmatpush.msra.mxu2 %v177_v18  ;;  %675 = vmatpush.msra.mxu3 %v381_v19  ;;  %v395_v17 = vld [vmem:[%s3570_s1 + $0xb18] sm:$0xff]  ;;  %v178_v18 = vld [vmem:[%s3570_s1 + $0x450] sm:$0xff] }
  0x4f   :  { %617 = vmatpush.msra.mxu0 %v164_v20  ;;  %636 = vmatpush.msra.mxu1 %v368_v21  ;;  %v382_v19 = vld [vmem:[%s3570_s1 + $0xab0] sm:$0xff]  ;;  %v179_v20 = vld [vmem:[%s3570_s1 + $0x458] sm:$0xff] }
  0x50   :  { %657 = vmatpush.msra.mxu2 %v165_v22  ;;  %676 = vmatpush.msra.mxu3 %v369_v23  ;;  %v383_v21 = vld [vmem:[%s3570_s1 + $0xab8] sm:$0xff]  ;;  %v166_v22 = vld [vmem:[%s3570_s1 + $0x3f0] sm:$0xff] }
  0x51   :  { %618 = vmatpush.msra.mxu0 %v152_v24  ;;  %637 = vmatpush.msra.mxu1 %v356_v25  ;;  %v370_v23 = vld [vmem:[%s3570_s1 + $0xa50] sm:$0xff]  ;;  %v167_v24 = vld [vmem:[%s3570_s1 + $0x3f8] sm:$0xff] }
  0x52   :  { %658 = vmatpush.msra.mxu2 %v153_v26  ;;  %677 = vmatpush.msra.mxu3 %v357_v27  ;;  %v371_v25 = vld [vmem:[%s3570_s1 + $0xa58] sm:$0xff]  ;;  %v154_v26 = vld [vmem:[%s3570_s1 + $0x390] sm:$0xff] }
  0x53   :  { %619 = vmatpush.msra.mxu0 %v140_v28  ;;  %638 = vmatpush.msra.mxu1 %v344_v29  ;;  %v358_v27 = vld [vmem:[%s3570_s1 + $0x9f0] sm:$0xff]  ;;  %v155_v28 = vld [vmem:[%s3570_s1 + $0x398] sm:$0xff] }
  0x54   :  { %659 = vmatpush.msra.mxu2 %v141_v30  ;;  %678 = vmatpush.msra.mxu3 %v345_v31  ;;  %v359_v29 = vld [vmem:[%s3570_s1 + $0x9f8] sm:$0xff]  ;;  %v142_v30 = vld [vmem:[%s3570_s1 + $0x330] sm:$0xff] }
  0x55   :  { %620 = vmatpush.msra.mxu0 %v128_v32  ;;  %639 = vmatpush.msra.mxu1 %v332_v33  ;;  %v346_v31 = vld [vmem:[%s3570_s1 + $0x990] sm:$0xff]  ;;  %v143_v32 = vld [vmem:[%s3570_s1 + $0x338] sm:$0xff] }
  0x56   :  { %660 = vmatpush.msra.mxu2 %v129_v34  ;;  %679 = vmatpush.msra.mxu3 %v333_v35  ;;  %v347_v33 = vld [vmem:[%s3570_s1 + $0x998] sm:$0xff]  ;;  %v130_v34 = vld [vmem:[%s3570_s1 + $0x2d0] sm:$0xff] }
  0x57   :  { %621 = vmatpush.msra.mxu0 %v116_v36  ;;  %640 = vmatpush.msra.mxu1 %v320_v37  ;;  %v334_v35 = vld [vmem:[%s3570_s1 + $0x930] sm:$0xff]  ;;  %v131_v36 = vld [vmem:[%s3570_s1 + $0x2d8] sm:$0xff] }
  0x58   :  { %661 = vmatpush.msra.mxu2 %v117_v38  ;;  %680 = vmatpush.msra.mxu3 %v321_v39  ;;  %v335_v37 = vld [vmem:[%s3570_s1 + $0x938] sm:$0xff]  ;;  %v118_v38 = vld [vmem:[%s3570_s1 + $0x270] sm:$0xff] }
  0x59   :  { %622 = vmatpush.msra.mxu0 %v104_v40  ;;  %641 = vmatpush.msra.mxu1 %v308_v41  ;;  %v322_v39 = vld [vmem:[%s3570_s1 + $0x8d0] sm:$0xff]  ;;  %v119_v40 = vld [vmem:[%s3570_s1 + $0x278] sm:$0xff] }
  0x5a   :  { %662 = vmatpush.msra.mxu2 %v105_v42  ;;  %681 = vmatpush.msra.mxu3 %v309_v43  ;;  %v323_v41 = vld [vmem:[%s3570_s1 + $0x8d8] sm:$0xff]  ;;  %v106_v42 = vld [vmem:[%s3570_s1 + $0x210] sm:$0xff] }
  0x5b   :  { %623 = vmatpush.msra.mxu0 %v92_v44  ;;  %642 = vmatpush.msra.mxu1 %v296_v45  ;;  %v310_v43 = vld [vmem:[%s3570_s1 + $0x870] sm:$0xff]  ;;  %v107_v44 = vld [vmem:[%s3570_s1 + $0x218] sm:$0xff] }
  0x5c   :  { %663 = vmatpush.msra.mxu2 %v93_v46  ;;  %682 = vmatpush.msra.mxu3 %v297_v47  ;;  %v311_v45 = vld [vmem:[%s3570_s1 + $0x878] sm:$0xff]  ;;  %v94_v46 = vld [vmem:[%s3570_s1 + $0x1b0] sm:$0xff] }
  0x5d   :  { %548 = vmatmul.f32.vlgmr.msrb.gmra.mxu0 %v1948_v54  ;;  %643 = vmatpush.msra.mxu1 %v284_v48  ;;  %v298_v47 = vld [vmem:[%s3570_s1 + $0x810] sm:$0xff]  ;;  %v95_v48 = vld [vmem:[%s3570_s1 + $0x1b8] sm:$0xff] }
  0x5e   :  { %624 = vmatpush.msra.mxu0 %v80_v49  ;;  %664 = vmatpush.msra.mxu2 %v81_v50  ;;  %v299_v49 = vld [vmem:[%s3570_s1 + $0x818] sm:$0xff]  ;;  %v82_v50 = vld [vmem:[%s3570_s1 + $0x150] sm:$0xff] }
  0x5f   :  { %683 = vmatpush.msra.mxu3 %v285_v51  ;;  %568 = vmatmul.f32.vlgmr.msrb.gmra.mxu1 %v1969_v60  ;;  %v286_v51 = vld [vmem:[%s3570_s1 + $0x7b0] sm:$0xff] }
  0x60   :  { %625 = vmatpush.msra.mxu0 %v68_v52  ;;  %644 = vmatpush.msra.mxu1 %v272_v53  ;;  %v83_v52 = vld [vmem:[%s3570_s1 + $0x158] sm:$0xff] }
  0x61   :  { %665 = vmatpush.msra.mxu2 %v69_v55  ;;  %684 = vmatpush.msra.mxu3 %v273_v56  ;;  %v287_v53 = vld [vmem:[%s3570_s1 + $0x7b8] sm:$0xff]  ;;  %v70_v55 = vld [vmem:[%s3570_s1 + $0xf0] sm:$0xff] }
  0x62   :  { %626 = vmatpush.msra.mxu0 %v56_v57  ;;  %645 = vmatpush.msra.mxu1 %v260_v58  ;;  %v274_v56 = vld [vmem:[%s3570_s1 + $0x750] sm:$0xff]  ;;  %v71_v57 = vld [vmem:[%s3570_s1 + $0xf8] sm:$0xff] }
  0x63   :  { %666 = vmatpush.msra.mxu2 %v57_v59  ;;  %685 = vmatpush.msra.mxu3 %v261_v61  ;;  %v275_v58 = vld [vmem:[%s3570_s1 + $0x758] sm:$0xff]  ;;  %v58_v59 = vld [vmem:[%s3570_s1 + $0x90] sm:$0xff] }
  0x64   :  { %627 = vmatpush.msra.mxu0 %v44_v62  ;;  %646 = vmatpush.msra.mxu1 %v248_v63  ;;  %v262_v61 = vld [vmem:[%s3570_s1 + $0x6f0] sm:$0xff]  ;;  %v59_v62 = vld [vmem:[%s3570_s1 + $0x98] sm:$0xff] }
  0x65   :  { %667 = vmatpush.msra.mxu2 %v45_v0  ;;  %686 = vmatpush.msra.mxu3 %v249_v1  ;;  %v263_v63 = vld [vmem:[%s3570_s1 + $0x6f8] sm:$0xff]  ;;  %v46_v0 = vld [vmem:[%s3570_s1 + $0x30] sm:$0xff] }
  0x66   :  { %628 = vmatmul.f32.vlgmr.msra.gmra.mxu0 %v1948_v54  ;;  %647 = vmatpush.msra.mxu1 %v236_v4  ;;  %v250_v1 = vld [vmem:[%s3570_s1 + $0x690] sm:$0xff]  ;;  %v228_v4 = vld [vmem:[%s3570_s1 + $0x5e0] sm:$0xff] }
  0x67   :  { %732 = vmatpush.msrb.mxu2 %v227_v2  ;;  %692 = vmatpush.msrb.mxu0 %v226_v3  ;;  %v47_v2 = vld [vmem:[%s3570_s1 + $0x38] sm:$0xff] }
  0x68   :  { %687 = vmatpush.msra.mxu3 %v237_v5  ;;  %648 = vmatmul.f32.vlgmr.msra.gmra.mxu1 %v1969_v60  ;;  %v251_v3 = vld [vmem:[%s3570_s1 + $0x698] sm:$0xff]  ;;  %v229_v5 = vld [vmem:[%s3570_s1 + $0x5e8] sm:$0xff] }
  0x69   :  { %693 = vmatpush.msrb.mxu0 %v214_v6  ;;  %712 = vmatpush.msrb.mxu1 %v418_v7  ;;  %v238_v6 = vld [vmem:[%s3570_s1 + $0x630] sm:$0xff]  ;;  %v239_v7 = vld [vmem:[%s3570_s1 + $0x638] sm:$0xff] }
  0x6a   :  { %733 = vmatpush.msrb.mxu2 %v215_v8  ;;  %752 = vmatpush.msrb.mxu3 %v419_v9  ;;  %v216_v8 = vld [vmem:[%s3570_s1 + $0x580] sm:$0xff] }
  0x6b   :  { %668 = vmatmul.f32.vlgmr.msra.gmra.mxu2 %v1948_v54  ;;  %694 = vmatpush.msrb.mxu0 %v202_v10  ;;  %v420_v9 = vld [vmem:[%s3570_s1 + $0xbe0] sm:$0xff]  ;;  %v217_v10 = vld [vmem:[%s3570_s1 + $0x588] sm:$0xff] }
  0x6c   :  { %713 = vmatpush.msrb.mxu1 %v406_v11  ;;  %734 = vmatpush.msrb.mxu2 %v203_v12  ;;  %v421_v11 = vld [vmem:[%s3570_s1 + $0xbe8] sm:$0xff]  ;;  %v204_v12 = vld [vmem:[%s3570_s1 + $0x520] sm:$0xff] }
  0x6d   :  { %753 = vmatpush.msrb.mxu3 %v407_v13  ;;  %695 = vmatpush.msrb.mxu0 %v190_v14  ;;  %v408_v13 = vld [vmem:[%s3570_s1 + $0xb80] sm:$0xff]  ;;  %v205_v14 = vld [vmem:[%s3570_s1 + $0x528] sm:$0xff] }
  0x6e   :  { %688 = vmatmul.f32.vlgmr.msra.gmra.mxu3 %v1969_v60  ;;  %714 = vmatpush.msrb.mxu1 %v394_v15  ;;  %v409_v15 = vld [vmem:[%s3570_s1 + $0xb88] sm:$0xff] }
  0x6f   :  { %735 = vmatpush.msrb.mxu2 %v191_v16  ;;  %754 = vmatpush.msrb.mxu3 %v395_v17  ;;  %v192_v16 = vld [vmem:[%s3570_s1 + $0x4c0] sm:$0xff] }
  0x70   :  { %696 = vmatpush.msrb.mxu0 %v178_v18  ;;  %715 = vmatpush.msrb.mxu1 %v382_v19  ;;  %v396_v17 = vld [vmem:[%s3570_s1 + $0xb20] sm:$0xff]  ;;  %v193_v18 = vld [vmem:[%s3570_s1 + $0x4c8] sm:$0xff] }
  0x71   :  { %736 = vmatpush.msrb.mxu2 %v179_v20  ;;  %755 = vmatpush.msrb.mxu3 %v383_v21  ;;  %v397_v19 = vld [vmem:[%s3570_s1 + $0xb28] sm:$0xff]  ;;  %v180_v20 = vld [vmem:[%s3570_s1 + $0x460] sm:$0xff] }
  0x72   :  { %697 = vmatpush.msrb.mxu0 %v166_v22  ;;  %716 = vmatpush.msrb.mxu1 %v370_v23  ;;  %v384_v21 = vld [vmem:[%s3570_s1 + $0xac0] sm:$0xff]  ;;  %v181_v22 = vld [vmem:[%s3570_s1 + $0x468] sm:$0xff] }
  0x73   :  { %737 = vmatpush.msrb.mxu2 %v167_v24  ;;  %756 = vmatpush.msrb.mxu3 %v371_v25  ;;  %v385_v23 = vld [vmem:[%s3570_s1 + $0xac8] sm:$0xff]  ;;  %v168_v24 = vld [vmem:[%s3570_s1 + $0x400] sm:$0xff] }
  0x74   :  { %698 = vmatpush.msrb.mxu0 %v154_v26  ;;  %717 = vmatpush.msrb.mxu1 %v358_v27  ;;  %v372_v25 = vld [vmem:[%s3570_s1 + $0xa60] sm:$0xff]  ;;  %v169_v26 = vld [vmem:[%s3570_s1 + $0x408] sm:$0xff] }
  0x75   :  { %738 = vmatpush.msrb.mxu2 %v155_v28  ;;  %757 = vmatpush.msrb.mxu3 %v359_v29  ;;  %v373_v27 = vld [vmem:[%s3570_s1 + $0xa68] sm:$0xff]  ;;  %v156_v28 = vld [vmem:[%s3570_s1 + $0x3a0] sm:$0xff] }
  0x76   :  { %699 = vmatpush.msrb.mxu0 %v142_v30  ;;  %718 = vmatpush.msrb.mxu1 %v346_v31  ;;  %v360_v29 = vld [vmem:[%s3570_s1 + $0xa00] sm:$0xff]  ;;  %v157_v30 = vld [vmem:[%s3570_s1 + $0x3a8] sm:$0xff] }
  0x77   :  { %739 = vmatpush.msrb.mxu2 %v143_v32  ;;  %758 = vmatpush.msrb.mxu3 %v347_v33  ;;  %v361_v31 = vld [vmem:[%s3570_s1 + $0xa08] sm:$0xff]  ;;  %v144_v32 = vld [vmem:[%s3570_s1 + $0x340] sm:$0xff] }
  0x78   :  { %700 = vmatpush.msrb.mxu0 %v130_v34  ;;  %719 = vmatpush.msrb.mxu1 %v334_v35  ;;  %v348_v33 = vld [vmem:[%s3570_s1 + $0x9a0] sm:$0xff]  ;;  %v145_v34 = vld [vmem:[%s3570_s1 + $0x348] sm:$0xff] }
  0x79   :  { %740 = vmatpush.msrb.mxu2 %v131_v36  ;;  %759 = vmatpush.msrb.mxu3 %v335_v37  ;;  %v349_v35 = vld [vmem:[%s3570_s1 + $0x9a8] sm:$0xff]  ;;  %v132_v36 = vld [vmem:[%s3570_s1 + $0x2e0] sm:$0xff] }
  0x7a   :  { %701 = vmatpush.msrb.mxu0 %v118_v38  ;;  %720 = vmatpush.msrb.mxu1 %v322_v39  ;;  %v336_v37 = vld [vmem:[%s3570_s1 + $0x940] sm:$0xff]  ;;  %v133_v38 = vld [vmem:[%s3570_s1 + $0x2e8] sm:$0xff] }
  0x7b   :  { %741 = vmatpush.msrb.mxu2 %v119_v40  ;;  %760 = vmatpush.msrb.mxu3 %v323_v41  ;;  %v337_v39 = vld [vmem:[%s3570_s1 + $0x948] sm:$0xff]  ;;  %v120_v40 = vld [vmem:[%s3570_s1 + $0x280] sm:$0xff] }
  0x7c   :  { %702 = vmatpush.msrb.mxu0 %v106_v42  ;;  %721 = vmatpush.msrb.mxu1 %v310_v43  ;;  %v324_v41 = vld [vmem:[%s3570_s1 + $0x8e0] sm:$0xff]  ;;  %v121_v42 = vld [vmem:[%s3570_s1 + $0x288] sm:$0xff] }
  0x7d   :  { %742 = vmatpush.msrb.mxu2 %v107_v44  ;;  %761 = vmatpush.msrb.mxu3 %v311_v45  ;;  %v325_v43 = vld [vmem:[%s3570_s1 + $0x8e8] sm:$0xff]  ;;  %v108_v44 = vld [vmem:[%s3570_s1 + $0x220] sm:$0xff] }
  0x7e   :  { %703 = vmatpush.msrb.mxu0 %v94_v46  ;;  %722 = vmatpush.msrb.mxu1 %v298_v47  ;;  %v312_v45 = vld [vmem:[%s3570_s1 + $0x880] sm:$0xff]  ;;  %v109_v46 = vld [vmem:[%s3570_s1 + $0x228] sm:$0xff] }
  0x7f   :  { %743 = vmatpush.msrb.mxu2 %v95_v48  ;;  %762 = vmatpush.msrb.mxu3 %v299_v49  ;;  %v313_v47 = vld [vmem:[%s3570_s1 + $0x888] sm:$0xff]  ;;  %v96_v48 = vld [vmem:[%s3570_s1 + $0x1c0] sm:$0xff] }
  0x80   :  { %704 = vmatpush.msrb.mxu0 %v82_v50  ;;  %723 = vmatpush.msrb.mxu1 %v286_v51  ;;  %v300_v49 = vld [vmem:[%s3570_s1 + $0x820] sm:$0xff]  ;;  %v97_v50 = vld [vmem:[%s3570_s1 + $0x1c8] sm:$0xff] }
  0x81   :  { %744 = vmatpush.msrb.mxu2 %v83_v52  ;;  %763 = vmatpush.msrb.mxu3 %v287_v53  ;;  %v301_v51 = vld [vmem:[%s3570_s1 + $0x828] sm:$0xff]  ;;  %v84_v52 = vld [vmem:[%s3570_s1 + $0x160] sm:$0xff] }
  0x82   :  { %705 = vmatpush.msrb.mxu0 %v70_v55  ;;  %724 = vmatpush.msrb.mxu1 %v274_v56  ;;  %v288_v53 = vld [vmem:[%s3570_s1 + $0x7c0] sm:$0xff]  ;;  %v85_v55 = vld [vmem:[%s3570_s1 + $0x168] sm:$0xff] }
  0x83   :  { %745 = vmatpush.msrb.mxu2 %v71_v57  ;;  %764 = vmatpush.msrb.mxu3 %v275_v58  ;;  %v289_v56 = vld [vmem:[%s3570_s1 + $0x7c8] sm:$0xff]  ;;  %v72_v57 = vld [vmem:[%s3570_s1 + $0x100] sm:$0xff] }
  0x84   :  { %706 = vmatpush.msrb.mxu0 %v58_v59  ;;  %725 = vmatpush.msrb.mxu1 %v262_v61  ;;  %v276_v58 = vld [vmem:[%s3570_s1 + $0x760] sm:$0xff]  ;;  %v73_v59 = vld [vmem:[%s3570_s1 + $0x108] sm:$0xff] }
  0x85   :  { %746 = vmatpush.msrb.mxu2 %v59_v62  ;;  %765 = vmatpush.msrb.mxu3 %v263_v63  ;;  %v277_v61 = vld [vmem:[%s3570_s1 + $0x768] sm:$0xff]  ;;  %v60_v62 = vld [vmem:[%s3570_s1 + $0xa0] sm:$0xff] }
  0x86   :  { %707 = vmatpush.msrb.mxu0 %v46_v0  ;;  %726 = vmatpush.msrb.mxu1 %v250_v1  ;;  %v264_v63 = vld [vmem:[%s3570_s1 + $0x700] sm:$0xff]  ;;  %v61_v0 = vld [vmem:[%s3570_s1 + $0xa8] sm:$0xff] }
  0x87   :  { %747 = vmatpush.msrb.mxu2 %v47_v2  ;;  %766 = vmatpush.msrb.mxu3 %v251_v3  ;;  %v265_v1 = vld [vmem:[%s3570_s1 + $0x708] sm:$0xff]  ;;  %v48_v2 = vld [vmem:[%s3570_s1 + $0x40] sm:$0xff] }
  0x88   :  { %772 = vmatpush.msra.mxu0 %v228_v4  ;;  %727 = vmatpush.msrb.mxu1 %v238_v6  ;;  %v252_v3 = vld [vmem:[%s3570_s1 + $0x6a0] sm:$0xff]  ;;  %v49_v4 = vld [vmem:[%s3570_s1 + $0x48] sm:$0xff]  ;;  %v230_v6 = vld [vmem:[%s3570_s1 + $0x5f0] sm:$0xff] }
  0x89   :  { %812 = vmatpush.msra.mxu2 %v229_v5  ;;  %767 = vmatpush.msrb.mxu3 %v239_v7  ;;  %v253_v5 = vld [vmem:[%s3570_s1 + $0x6a8] sm:$0xff]  ;;  %v231_v7 = vld [vmem:[%s3570_s1 + $0x5f8] sm:$0xff] }
  0x8a   :  { %773 = vmatpush.msra.mxu0 %v216_v8  ;;  %792 = vmatpush.msra.mxu1 %v420_v9  ;;  %v240_v8 = vld [vmem:[%s3570_s1 + $0x640] sm:$0xff]  ;;  %v241_v9 = vld [vmem:[%s3570_s1 + $0x648] sm:$0xff] }
  0x8b   :  { %813 = vmatpush.msra.mxu2 %v217_v10  ;;  %832 = vmatpush.msra.mxu3 %v421_v11  ;;  %v218_v10 = vld [vmem:[%s3570_s1 + $0x590] sm:$0xff] }
  0x8c   :  { %774 = vmatpush.msra.mxu0 %v204_v12  ;;  %793 = vmatpush.msra.mxu1 %v408_v13  ;;  %v422_v11 = vld [vmem:[%s3570_s1 + $0xbf0] sm:$0xff]  ;;  %v219_v12 = vld [vmem:[%s3570_s1 + $0x598] sm:$0xff] }
  0x8d   :  { %814 = vmatpush.msra.mxu2 %v205_v14  ;;  %833 = vmatpush.msra.mxu3 %v409_v15  ;;  %v206_v13 = vld [vmem:[%s3570_s1 + $0x530] sm:$0xff]  ;;  %v207_v15 = vld [vmem:[%s3570_s1 + $0x538] sm:$0xff] }
  0x8e   :  { %775 = vmatpush.msra.mxu0 %v192_v16  ;;  %794 = vmatpush.msra.mxu1 %v396_v17  ;;  %v410_v14 = vld [vmem:[%s3570_s1 + $0xb90] sm:$0xff]  ;;  %v411_v16 = vld [vmem:[%s3570_s1 + $0xb98] sm:$0xff] }
  0x8f   :  { %815 = vmatpush.msra.mxu2 %v193_v18  ;;  %834 = vmatpush.msra.mxu3 %v397_v19  ;;  %v398_v17 = vld [vmem:[%s3570_s1 + $0xb30] sm:$0xff]  ;;  %v195_v18 = vld [vmem:[%s3570_s1 + $0x4d8] sm:$0xff] }
  0x90   :  { %776 = vmatpush.msra.mxu0 %v180_v20  ;;  %795 = vmatpush.msra.mxu1 %v384_v21  ;;  %v399_v19 = vld [vmem:[%s3570_s1 + $0xb38] sm:$0xff]  ;;  %v182_v20 = vld [vmem:[%s3570_s1 + $0x470] sm:$0xff] }
  0x91   :  { %816 = vmatpush.msra.mxu2 %v181_v22  ;;  %835 = vmatpush.msra.mxu3 %v385_v23  ;;  %v386_v21 = vld [vmem:[%s3570_s1 + $0xad0] sm:$0xff]  ;;  %v183_v22 = vld [vmem:[%s3570_s1 + $0x478] sm:$0xff] }
  0x92   :  { %777 = vmatpush.msra.mxu0 %v168_v24  ;;  %796 = vmatpush.msra.mxu1 %v372_v25  ;;  %v387_v23 = vld [vmem:[%s3570_s1 + $0xad8] sm:$0xff]  ;;  %v170_v24 = vld [vmem:[%s3570_s1 + $0x410] sm:$0xff] }
  0x93   :  { %817 = vmatpush.msra.mxu2 %v169_v26  ;;  %836 = vmatpush.msra.mxu3 %v373_v27  ;;  %v374_v25 = vld [vmem:[%s3570_s1 + $0xa70] sm:$0xff]  ;;  %v171_v26 = vld [vmem:[%s3570_s1 + $0x418] sm:$0xff] }
  0x94   :  { %778 = vmatpush.msra.mxu0 %v156_v28  ;;  %797 = vmatpush.msra.mxu1 %v360_v29  ;;  %v375_v27 = vld [vmem:[%s3570_s1 + $0xa78] sm:$0xff]  ;;  %v158_v28 = vld [vmem:[%s3570_s1 + $0x3b0] sm:$0xff] }
  0x95   :  { %818 = vmatpush.msra.mxu2 %v157_v30  ;;  %837 = vmatpush.msra.mxu3 %v361_v31  ;;  %v362_v29 = vld [vmem:[%s3570_s1 + $0xa10] sm:$0xff]  ;;  %v159_v30 = vld [vmem:[%s3570_s1 + $0x3b8] sm:$0xff] }
  0x96   :  { %779 = vmatpush.msra.mxu0 %v144_v32  ;;  %798 = vmatpush.msra.mxu1 %v348_v33  ;;  %v363_v31 = vld [vmem:[%s3570_s1 + $0xa18] sm:$0xff]  ;;  %v146_v32 = vld [vmem:[%s3570_s1 + $0x350] sm:$0xff] }
  0x97   :  { %819 = vmatpush.msra.mxu2 %v145_v34  ;;  %838 = vmatpush.msra.mxu3 %v349_v35  ;;  %v350_v33 = vld [vmem:[%s3570_s1 + $0x9b0] sm:$0xff]  ;;  %v147_v34 = vld [vmem:[%s3570_s1 + $0x358] sm:$0xff] }
  0x98   :  { %780 = vmatpush.msra.mxu0 %v132_v36  ;;  %799 = vmatpush.msra.mxu1 %v336_v37  ;;  %v351_v35 = vld [vmem:[%s3570_s1 + $0x9b8] sm:$0xff]  ;;  %v134_v36 = vld [vmem:[%s3570_s1 + $0x2f0] sm:$0xff] }
  0x99   :  { %820 = vmatpush.msra.mxu2 %v133_v38  ;;  %839 = vmatpush.msra.mxu3 %v337_v39  ;;  %v338_v37 = vld [vmem:[%s3570_s1 + $0x950] sm:$0xff]  ;;  %v135_v38 = vld [vmem:[%s3570_s1 + $0x2f8] sm:$0xff] }
  0x9a   :  { %781 = vmatpush.msra.mxu0 %v120_v40  ;;  %800 = vmatpush.msra.mxu1 %v324_v41  ;;  %v339_v39 = vld [vmem:[%s3570_s1 + $0x958] sm:$0xff]  ;;  %v122_v40 = vld [vmem:[%s3570_s1 + $0x290] sm:$0xff] }
  0x9b   :  { %821 = vmatpush.msra.mxu2 %v121_v42  ;;  %840 = vmatpush.msra.mxu3 %v325_v43  ;;  %v326_v41 = vld [vmem:[%s3570_s1 + $0x8f0] sm:$0xff]  ;;  %v123_v42 = vld [vmem:[%s3570_s1 + $0x298] sm:$0xff] }
  0x9c   :  { %782 = vmatpush.msra.mxu0 %v108_v44  ;;  %801 = vmatpush.msra.mxu1 %v312_v45  ;;  %v327_v43 = vld [vmem:[%s3570_s1 + $0x8f8] sm:$0xff]  ;;  %v110_v44 = vld [vmem:[%s3570_s1 + $0x230] sm:$0xff] }
  0x9d   :  { %822 = vmatpush.msra.mxu2 %v109_v46  ;;  %841 = vmatpush.msra.mxu3 %v313_v47  ;;  %v314_v45 = vld [vmem:[%s3570_s1 + $0x890] sm:$0xff]  ;;  %v111_v46 = vld [vmem:[%s3570_s1 + $0x238] sm:$0xff] }
  0x9e   :  { %783 = vmatpush.msra.mxu0 %v96_v48  ;;  %802 = vmatpush.msra.mxu1 %v300_v49  ;;  %v315_v47 = vld [vmem:[%s3570_s1 + $0x898] sm:$0xff]  ;;  %v98_v48 = vld [vmem:[%s3570_s1 + $0x1d0] sm:$0xff] }
  0x9f   :  { %823 = vmatpush.msra.mxu2 %v97_v50  ;;  %842 = vmatpush.msra.mxu3 %v301_v51  ;;  %v302_v49 = vld [vmem:[%s3570_s1 + $0x830] sm:$0xff]  ;;  %v99_v50 = vld [vmem:[%s3570_s1 + $0x1d8] sm:$0xff] }
  0xa0   :  { %748 = vmatmul.f32.vlgmr.msrb.gmra.mxu2 %v1948_v54  ;;  %784 = vmatpush.msra.mxu0 %v84_v52  ;;  %v303_v51 = vld [vmem:[%s3570_s1 + $0x838] sm:$0xff]  ;;  %v290_v52 = vld [vmem:[%s3570_s1 + $0x7d0] sm:$0xff] }
  0xa1   :  { %803 = vmatpush.msra.mxu1 %v288_v53  ;;  %824 = vmatpush.msra.mxu2 %v85_v55  ;;  %v86_v53 = vld [vmem:[%s3570_s1 + $0x170] sm:$0xff]  ;;  %v87_v55 = vld [vmem:[%s3570_s1 + $0x178] sm:$0xff] }
  0xa2   :  { %843 = vmatpush.msra.mxu3 %v289_v56  ;;  %785 = vmatpush.msra.mxu0 %v72_v57  ;;  %v291_v56 = vld [vmem:[%s3570_s1 + $0x7d8] sm:$0xff]  ;;  %v1529_v57 = vld [vmem:[%s3571_s0] sm:$0xff] }
  0xa3   :  { %768 = vmatmul.f32.vlgmr.msrb.gmra.mxu3 %v1969_v60  ;;  %804 = vmatpush.msra.mxu1 %v276_v58  ;;  %v74_v58 = vld [vmem:[%s3570_s1 + $0x110] sm:$0xff] }
  0xa4   :  { %825 = vmatpush.msra.mxu2 %v73_v59  ;;  %844 = vmatpush.msra.mxu3 %v277_v61  ;;  %v278_v59 = vld [vmem:[%s3570_s1 + $0x770] sm:$0xff]  ;;  %v75_v61 = vld [vmem:[%s3570_s1 + $0x118] sm:$0xff] }
  0xa5   :  { %786 = vmatpush.msra.mxu0 %v60_v62  ;;  %805 = vmatpush.msra.mxu1 %v264_v63  ;;  %v279_v62 = vld [vmem:[%s3570_s1 + $0x778] sm:$0xff]  ;;  %v1530_v63 = vld [vmem:[%s3571_s0 + $0x8] sm:$0xff] }
  0xa6   :  { %826 = vmatpush.msra.mxu2 %v61_v0  ;;  %845 = vmatpush.msra.mxu3 %v265_v1  ;;  %v62_v0 = vld [vmem:[%s3570_s1 + $0xb0] sm:$0xff] }
  0xa7   :  { %787 = vmatpush.msra.mxu0 %v48_v2  ;;  %806 = vmatpush.msra.mxu1 %v252_v3  ;;  %v266_v1 = vld [vmem:[%s3570_s1 + $0x710] sm:$0xff]  ;;  %v63_v2 = vld [vmem:[%s3570_s1 + $0xb8] sm:$0xff] }
  0xa8   :  { %827 = vmatpush.msra.mxu2 %v49_v4  ;;  %846 = vmatpush.msra.mxu3 %v253_v5  ;;  %v267_v3 = vld [vmem:[%s3570_s1 + $0x718] sm:$0xff]  ;;  %v50_v4 = vld [vmem:[%s3570_s1 + $0x50] sm:$0xff] }
  0xa9   :  { %708 = vmatmul.f32.vlgmr.msrb.gmra.mxu0 %v1948_v54  ;;  %828 = vmatmul.f32.vlgmr.msra.gmra.mxu2 %v1948_v54  ;;  %v423_v54 = vld [vmem:[%s3570_s1 + $0xbf8] sm:$0xff]  ;;  %v254_v5 = vld [vmem:[%s3570_s1 + $0x6b0] sm:$0xff] }
  0xaa   :  { %852 = vmatpush.msrb.mxu0 %v230_v6  ;;  %892 = vmatpush.msrb.mxu2 %v231_v7  ;;  %v51_v6 = vld [vmem:[%s3570_s1 + $0x58] sm:$0xff] }
  0xab   :  { %807 = vmatpush.msra.mxu1 %v240_v8  ;;  %847 = vmatpush.msra.mxu3 %v241_v9  ;;  %v255_v7 = vld [vmem:[%s3570_s1 + $0x6b8] sm:$0xff]  ;;  %v242_v8 = vld [vmem:[%s3570_s1 + $0x650] sm:$0xff] }
  0xac   :  { %728 = vmatmul.f32.vlgmr.msrb.gmra.mxu1 %v1969_v60  ;;  %848 = vmatmul.f32.vlgmr.msra.gmra.mxu3 %v1969_v60  ;;  %v194_v60 = vld [vmem:[%s3570_s1 + $0x4d0] sm:$0xff]  ;;  %v243_v9 = vld [vmem:[%s3570_s1 + $0x658] sm:$0xff] }
  0xad   :  { %853 = vmatpush.msrb.mxu0 %v218_v10  ;;  %872 = vmatpush.msrb.mxu1 %v422_v11  ;;  %v1004_v10 = vld [vmem:[%s3572_s3 + $0x1e0] sm:$0xff]  ;;  %v1005_v11 = vld [vmem:[%s3572_s3 + $0x1e8] sm:$0xff] }
  0xae   :  { %893 = vmatpush.msrb.mxu2 %v219_v12  ;;  %912 = vmatpush.msrb.mxu3 %v423_v54  ;;  %v1000_v12 = vld [vmem:[%s3572_s3 + $0x1c0] sm:$0xff]  ;;  %v1001_v54 = vld [vmem:[%s3572_s3 + $0x1c8] sm:$0xff] }
  0xaf   :  { %854 = vmatpush.msrb.mxu0 %v206_v13  ;;  %873 = vmatpush.msrb.mxu1 %v410_v14  ;;  %v996_v13 = vld [vmem:[%s3572_s3 + $0x1a0] sm:$0xff]  ;;  %v997_v14 = vld [vmem:[%s3572_s3 + $0x1a8] sm:$0xff] }
  0xb0   :  { %894 = vmatpush.msrb.mxu2 %v207_v15  ;;  %913 = vmatpush.msrb.mxu3 %v411_v16  ;;  %v992_v15 = vld [vmem:[%s3572_s3 + $0x180] sm:$0xff]  ;;  %v993_v16 = vld [vmem:[%s3572_s3 + $0x188] sm:$0xff] }
  0xb1   :  { %855 = vmatpush.msrb.mxu0 %v194_v60  ;;  %874 = vmatpush.msrb.mxu1 %v398_v17  ;;  %v988_v60 = vld [vmem:[%s3572_s3 + $0x160] sm:$0xff]  ;;  %v989_v17 = vld [vmem:[%s3572_s3 + $0x168] sm:$0xff] }
  0xb2   :  { %895 = vmatpush.msrb.mxu2 %v195_v18  ;;  %914 = vmatpush.msrb.mxu3 %v399_v19  ;;  %v984_v18 = vld [vmem:[%s3572_s3 + $0x140] sm:$0xff]  ;;  %v985_v19 = vld [vmem:[%s3572_s3 + $0x148] sm:$0xff] }
  0xb3   :  { %856 = vmatpush.msrb.mxu0 %v182_v20  ;;  %875 = vmatpush.msrb.mxu1 %v386_v21  ;;  %v1068_v20 = vld [vmem:[%s3572_s3 + $0x3e0] sm:$0xff] }
  0xb4   :  { %896 = vmatpush.msrb.mxu2 %v183_v22  ;;  %915 = vmatpush.msrb.mxu3 %v387_v23  ;;  %v1064_v21 = vld [vmem:[%s3572_s3 + $0x3c0] sm:$0xff]  ;;  %v981_v23 = vld [vmem:[%s3572_s3 + $0x128] sm:$0xff] }
  0xb5   :  { %857 = vmatpush.msrb.mxu0 %v170_v24  ;;  %876 = vmatpush.msrb.mxu1 %v374_v25  ;;  %v980_v22 = vld [vmem:[%s3572_s3 + $0x120] sm:$0xff] }
  0xb6   :  { %897 = vmatpush.msrb.mxu2 %v171_v26  ;;  %916 = vmatpush.msrb.mxu3 %v375_v27  ;;  %v1060_v24 = vld [vmem:[%s3572_s3 + $0x3a0] sm:$0xff]  ;;  %v977_v27 = vld [vmem:[%s3572_s3 + $0x108] sm:$0xff] }
  0xb7   :  { %858 = vmatpush.msrb.mxu0 %v158_v28  ;;  %877 = vmatpush.msrb.mxu1 %v362_v29  ;;  %v1132_v25 = vld [vmem:[%s3572_s3 + $0x5e0] sm:$0xff] }
  0xb8   :  { %898 = vmatpush.msrb.mxu2 %v159_v30  ;;  %917 = vmatpush.msrb.mxu3 %v363_v31  ;;  %v976_v26 = vld [vmem:[%s3572_s3 + $0x100] sm:$0xff]  ;;  %v973_v31 = vld [vmem:[%s3572_s3 + $0xe8] sm:$0xff] }
  0xb9   :  { %859 = vmatpush.msrb.mxu0 %v146_v32  ;;  %878 = vmatpush.msrb.mxu1 %v350_v33  ;;  %v1128_v28 = vld [vmem:[%s3572_s3 + $0x5c0] sm:$0xff] }
  0xba   :  { %899 = vmatpush.msrb.mxu2 %v147_v34  ;;  %918 = vmatpush.msrb.mxu3 %v351_v35  ;;  %v1056_v29 = vld [vmem:[%s3572_s3 + $0x380] sm:$0xff] }
  0xbb   :  { %860 = vmatpush.msrb.mxu0 %v134_v36  ;;  %879 = vmatpush.msrb.mxu1 %v338_v37  ;;  %v972_v30 = vld [vmem:[%s3572_s3 + $0xe0] sm:$0xff]  ;;  %v969_v36 = vld [vmem:[%s3572_s3 + $0xc8] sm:$0xff] }
  0xbc   :  { %900 = vmatpush.msrb.mxu2 %v135_v38  ;;  %919 = vmatpush.msrb.mxu3 %v339_v39  ;;  %v1124_v32 = vld [vmem:[%s3572_s3 + $0x5a0] sm:$0xff] }
  0xbd   :  { %861 = vmatpush.msrb.mxu0 %v122_v40  ;;  %880 = vmatpush.msrb.mxu1 %v326_v41  ;;  %v1052_v33 = vld [vmem:[%s3572_s3 + $0x360] sm:$0xff]  ;;  %v965_v40 = vld [vmem:[%s3572_s3 + $0xa8] sm:$0xff] }
  0xbe   :  { %901 = vmatpush.msrb.mxu2 %v123_v42  ;;  %920 = vmatpush.msrb.mxu3 %v327_v43  ;;  %v1120_v34 = vld [vmem:[%s3572_s3 + $0x580] sm:$0xff] }
  0xbf   :  { %862 = vmatpush.msrb.mxu0 %v110_v44  ;;  %881 = vmatpush.msrb.mxu1 %v314_v45  ;;  %v968_v35 = vld [vmem:[%s3572_s3 + $0xc0] sm:$0xff]  ;;  %v961_v44 = vld [vmem:[%s3572_s3 + $0x88] sm:$0xff] }
  0xc0   :  { %902 = vmatpush.msrb.mxu2 %v111_v46  ;;  %921 = vmatpush.msrb.mxu3 %v315_v47  ;;  %v1048_v37 = vld [vmem:[%s3572_s3 + $0x340] sm:$0xff]  ;;  %v957_v47 = vld [vmem:[%s3572_s3 + $0x68] sm:$0xff] }
  0xc1   :  { %863 = vmatpush.msrb.mxu0 %v98_v48  ;;  %882 = vmatpush.msrb.mxu1 %v302_v49  ;;  %v1116_v38 = vld [vmem:[%s3572_s3 + $0x560] sm:$0xff] }
  0xc2   :  { %903 = vmatpush.msrb.mxu2 %v99_v50  ;;  %922 = vmatpush.msrb.mxu3 %v303_v51  ;;  %v964_v39 = vld [vmem:[%s3572_s3 + $0xa0] sm:$0xff]  ;;  %v953_v50 = vld [vmem:[%s3572_s3 + $0x48] sm:$0xff] }
  0xc3   :  { %788 = vmatmul.f32.vlgmr.msra.gmra.mxu0 %v1529_v57  ;;  %883 = vmatpush.msrb.mxu1 %v290_v52  ;;  %v1044_v41 = vld [vmem:[%s3572_s3 + $0x320] sm:$0xff]  ;;  %v949_v52 = vld [vmem:[%s3572_s3 + $0x28] sm:$0xff] }
  0xc4   :  { %864 = vmatpush.msrb.mxu0 %v86_v53  ;;  %904 = vmatpush.msrb.mxu2 %v87_v55  ;;  %v1112_v42 = vld [vmem:[%s3572_s3 + $0x540] sm:$0xff]  ;;  %v945_v55 = vld [vmem:[%s3572_s3 + $0x8] sm:$0xff] }
  0xc5   :  { %923 = vmatpush.msrb.mxu3 %v291_v56  ;;  %808 = vmatmul.f32.vlgmr.msra.gmra.mxu1 %v1530_v63  ;;  %v960_v43 = vld [vmem:[%s3572_s3 + $0x80] sm:$0xff]  ;;  %v1069_v56 = vld [vmem:[%s3572_s3 + $0x3e8] sm:$0xff] }
  0xc6   :  { %865 = vmatpush.msrb.mxu0 %v74_v58  ;;  %884 = vmatpush.msrb.mxu1 %v278_v59  ;;  %v1040_v45 = vld [vmem:[%s3572_s3 + $0x300] sm:$0xff]  ;;  %v1065_v58 = vld [vmem:[%s3572_s3 + $0x3c8] sm:$0xff]  ;;  %v1066_v59 = vld [vmem:[%s3572_s3 + $0x3d0] sm:$0xff] }
  0xc7   :  { %905 = vmatpush.msrb.mxu2 %v75_v61  ;;  %924 = vmatpush.msrb.mxu3 %v279_v62  ;;  %v956_v46 = vld [vmem:[%s3572_s3 + $0x60] sm:$0xff]  ;;  %v1061_v61 = vld [vmem:[%s3572_s3 + $0x3a8] sm:$0xff]  ;;  %v1062_v62 = vld [vmem:[%s3572_s3 + $0x3b0] sm:$0xff] }
  0xc8   :  { %866 = vmatpush.msrb.mxu0 %v62_v0  ;;  %885 = vmatpush.msrb.mxu1 %v266_v1  ;;  %v1036_v48 = vld [vmem:[%s3572_s3 + $0x2e0] sm:$0xff]  ;;  %v1058_v0 = vld [vmem:[%s3572_s3 + $0x390] sm:$0xff]  ;;  %v1053_v1 = vld [vmem:[%s3572_s3 + $0x368] sm:$0xff] }
  0xc9   :  { %906 = vmatpush.msrb.mxu2 %v63_v2  ;;  %925 = vmatpush.msrb.mxu3 %v267_v3  ;;  %v952_v49 = vld [vmem:[%s3572_s3 + $0x40] sm:$0xff]  ;;  %v1054_v2 = vld [vmem:[%s3572_s3 + $0x370] sm:$0xff] }
  0xca   :  { %867 = vmatpush.msrb.mxu0 %v50_v4  ;;  %886 = vmatpush.msrb.mxu1 %v254_v5  ;;  %v948_v51 = vld [vmem:[%s3572_s3 + $0x20] sm:$0xff]  ;;  %v1049_v5 = vld [vmem:[%s3572_s3 + $0x348] sm:$0xff] }
  0xcb   :  { %907 = vmatpush.msrb.mxu2 %v51_v6  ;;  %926 = vmatpush.msrb.mxu3 %v255_v7  ;;  %v944_v53 = vld [vmem:[%s3572_s3] sm:$0xff]  ;;  %v1050_v6 = vld [vmem:[%s3572_s3 + $0x350] sm:$0xff] }
  0xcc   :  { %868 = vmatmul.f32.vlgmr.msrb.gmra.mxu0 %v1529_v57  ;;  %908 = vmatmul.f32.vlgmr.msrb.gmra.mxu2 %v1529_v57  ;;  %v1070_v57 = vld [vmem:[%s3572_s3 + $0x3f0] sm:$0xff]  ;;  %v1032_v3 = vld [vmem:[%s3572_s3 + $0x2c0] sm:$0xff] }
  0xcd   :  { %887 = vmatpush.msrb.mxu1 %v242_v8  ;;  %927 = vmatpush.msrb.mxu3 %v243_v9  ;;  %v1108_v4 = vld [vmem:[%s3572_s3 + $0x520] sm:$0xff]  ;;  %v1045_v9 = vld [vmem:[%s3572_s3 + $0x328] sm:$0xff] }
  0xce   :  { %888 = vmatmul.f32.vlgmr.msrb.gmra.mxu1 %v1530_v63  ;;  %928 = vmatmul.f32.vlgmr.msrb.gmra.mxu3 %v1530_v63  ;;  %v1057_v63 = vld [vmem:[%s3572_s3 + $0x388] sm:$0xff]  ;;  %v1028_v7 = vld [vmem:[%s3572_s3 + $0x2a0] sm:$0xff] }
  0xcf   :  { %1146 = vmatpush.msra.mxu0 %v1004_v10  ;;  %1206 = vmatpush.msra.mxu3 %v1005_v11  ;;  %v1104_v8 = vld [vmem:[%s3572_s3 + $0x500] sm:$0xff]  ;;  %v1046_v10 = vld [vmem:[%s3572_s3 + $0x330] sm:$0xff] }
  0xd0   :  { %1166 = vmatpush.msra.mxu1 %v1068_v20  ;;  %1186 = vmatpush.msra.mxu2 %v1132_v25  ;;  %v1024_v11 = vld [vmem:[%s3572_s3 + $0x280] sm:$0xff] }
  0xd1   :  { %1147 = vmatpush.msra.mxu0 %v1000_v12  ;;  %1207 = vmatpush.msra.mxu3 %v1001_v54  ;;  %v1100_v12 = vld [vmem:[%s3572_s3 + $0x4e0] sm:$0xff]  ;;  %v2978_v54 = vpop.f32.mrf.mxu2 }
  0xd2   :  { %1167 = vmatpush.msra.mxu1 %v1064_v21  ;;  %1187 = vmatpush.msra.mxu2 %v1128_v28  ;;  %v1016_v20 = vld [vmem:[%s3572_s3 + $0x240] sm:$0xff]  ;;  %v1030_v28 = vld [vmem:[%s3572_s3 + $0x2b0] sm:$0xff] }
  0xd3   :  { %1148 = vmatpush.msra.mxu0 %v996_v13  ;;  %1208 = vmatpush.msra.mxu3 %v997_v14  ;;  %v1041_v13 = vld [vmem:[%s3572_s3 + $0x308] sm:$0xff]  ;;  %v1042_v14 = vld [vmem:[%s3572_s3 + $0x310] sm:$0xff]  ;;  %v1092_v21 = vld [vmem:[%s3572_s3 + $0x4a0] sm:$0xff] }
  0xd4   :  { %1168 = vmatpush.msra.mxu1 %v1060_v24  ;;  %1188 = vmatpush.msra.mxu2 %v1124_v32  ;;  %v3014_v24 = vpop.f32.mrf.mxu1  ;;  %v1012_v25 = vld [vmem:[%s3572_s3 + $0x220] sm:$0xff]  ;;  %v1025_v32 = vld [vmem:[%s3572_s3 + $0x288] sm:$0xff] }
  0xd5   :  { %1149 = vmatpush.msra.mxu0 %v992_v15  ;;  %1209 = vmatpush.msra.mxu3 %v993_v16  ;;  %v1020_v15 = vld [vmem:[%s3572_s3 + $0x260] sm:$0xff] }
  0xd6   :  { %1169 = vmatpush.msra.mxu1 %v1056_v29  ;;  %1189 = vmatpush.msra.mxu2 %v1120_v34  ;;  %v1096_v16 = vld [vmem:[%s3572_s3 + $0x4c0] sm:$0xff]  ;;  %v1133_v34 = vld [vmem:[%s3572_s3 + $0x5e8] sm:$0xff] }
  0xd7   :  { %1150 = vmatpush.msra.mxu0 %v988_v60  ;;  %1210 = vmatpush.msra.mxu3 %v989_v17  ;;  %v1037_v60 = vld [vmem:[%s3572_s3 + $0x2e8] sm:$0xff]  ;;  %v1038_v17 = vld [vmem:[%s3572_s3 + $0x2f0] sm:$0xff] }
  0xd8   :  { %1170 = vmatpush.msra.mxu1 %v1052_v33  ;;  %1190 = vmatpush.msra.mxu2 %v1116_v38  ;;  %v1026_v33 = vld [vmem:[%s3572_s3 + $0x290] sm:$0xff] }
  0xd9   :  { %1151 = vmatpush.msra.mxu0 %v984_v18  ;;  %1211 = vmatpush.msra.mxu3 %v985_v19  ;;  %v2998_v18 = vpop.f32.mrf.mxu3  ;;  %v3000_v19 = vpop.f32.mrf.mxu0  ;;  %v1022_v38 = vld [vmem:[%s3572_s3 + $0x270] sm:$0xff] }
  0xda   :  { %1171 = vmatpush.msra.mxu1 %v1048_v37  ;;  %1191 = vmatpush.msra.mxu2 %v1112_v42  ;;  %v3028_v29 = vpop.f32.mrf.mxu2  ;;  %v1021_v37 = vld [vmem:[%s3572_s3 + $0x268] sm:$0xff] }
  0xdb   :  { %1152 = vmatpush.msra.mxu0 %v980_v22  ;;  %1212 = vmatpush.msra.mxu3 %v981_v23  ;;  %v1033_v22 = vld [vmem:[%s3572_s3 + $0x2c8] sm:$0xff]  ;;  %v1034_v23 = vld [vmem:[%s3572_s3 + $0x2d0] sm:$0xff] }
  0xdc   :  { %1172 = vmatpush.msra.mxu1 %v1044_v41  ;;  %1192 = vmatpush.msra.mxu2 %v1108_v4  ;;  %v1076_v41 = vld [vmem:[%s3572_s3 + $0x420] sm:$0xff]  ;;  %v1017_v42 = vld [vmem:[%s3572_s3 + $0x248] sm:$0xff] }
  0xdd   :  { %1153 = vmatpush.msra.mxu0 %v976_v26  ;;  %1213 = vmatpush.msra.mxu3 %v977_v27  ;;  %v1088_v26 = vld [vmem:[%s3572_s3 + $0x480] sm:$0xff]  ;;  %v1029_v27 = vld [vmem:[%s3572_s3 + $0x2a8] sm:$0xff] }
  0xde   :  { %1173 = vmatpush.msra.mxu1 %v1040_v45  ;;  %1193 = vmatpush.msra.mxu2 %v1104_v8  ;;  %v1072_v45 = vld [vmem:[%s3572_s3 + $0x400] sm:$0xff]  ;;  %v1101_v4 = vld [vmem:[%s3572_s3 + $0x4e8] sm:$0xff]  ;;  %v982_v8 = vld [vmem:[%s3572_s3 + $0x130] sm:$0xff] }
  0xdf   :  { %1154 = vmatpush.msra.mxu0 %v972_v30  ;;  %1214 = vmatpush.msra.mxu3 %v973_v31  ;;  %v1008_v30 = vld [vmem:[%s3572_s3 + $0x200] sm:$0xff] }
  0xe0   :  { %1174 = vmatpush.msra.mxu1 %v1036_v48  ;;  %1194 = vmatpush.msra.mxu2 %v1100_v12  ;;  %v1084_v31 = vld [vmem:[%s3572_s3 + $0x460] sm:$0xff]  ;;  %v3082_v48 = vpop.f32.mrf.mxu1 }
  0xe1   :  { %1155 = vmatpush.msra.mxu0 %v968_v35  ;;  %1215 = vmatpush.msra.mxu3 %v969_v36  ;;  %v3045_v35 = vpop.f32.mrf.mxu0  ;;  %v1080_v36 = vld [vmem:[%s3572_s3 + $0x440] sm:$0xff] }
  0xe2   :  { %1175 = vmatpush.msra.mxu1 %v1032_v3  ;;  %1195 = vmatpush.msra.mxu2 %v1096_v16  ;;  %v978_v16 = vld [vmem:[%s3572_s3 + $0x110] sm:$0xff] }
  0xe3   :  { %1156 = vmatpush.msra.mxu0 %v964_v39  ;;  %1216 = vmatpush.msra.mxu3 %v965_v40  ;;  %v3056_v39 = vpop.f32.mrf.mxu3  ;;  %v1129_v40 = vld [vmem:[%s3572_s3 + $0x5c8] sm:$0xff] }
  0xe4   :  { %1176 = vmatpush.msra.mxu1 %v1028_v7  ;;  %1196 = vmatpush.msra.mxu2 %v1092_v21  ;;  %v1097_v7 = vld [vmem:[%s3572_s3 + $0x4c8] sm:$0xff] }
  0xe5   :  { %1157 = vmatpush.msra.mxu0 %v960_v43  ;;  %1217 = vmatpush.msra.mxu3 %v961_v44  ;;  %v1018_v43 = vld [vmem:[%s3572_s3 + $0x250] sm:$0xff]  ;;  %v1125_v44 = vld [vmem:[%s3572_s3 + $0x5a8] sm:$0xff] }
  0xe6   :  { %1177 = vmatpush.msra.mxu1 %v1024_v11  ;;  %1197 = vmatpush.msra.mxu2 %v1088_v26 }
  0xe7   :  { %1158 = vmatpush.msra.mxu0 %v956_v46  ;;  %1218 = vmatpush.msra.mxu3 %v957_v47  ;;  %v1013_v46 = vld [vmem:[%s3572_s3 + $0x228] sm:$0xff]  ;;  %v1014_v47 = vld [vmem:[%s3572_s3 + $0x230] sm:$0xff] }
  0xe8   :  { %1178 = vmatpush.msra.mxu1 %v1020_v15  ;;  %1198 = vmatpush.msra.mxu2 %v1084_v31  ;;  %v1093_v15 = vld [vmem:[%s3572_s3 + $0x4a8] sm:$0xff] }
  0xe9   :  { %1159 = vmatpush.msra.mxu0 %v952_v49  ;;  %1219 = vmatpush.msra.mxu3 %v953_v50  ;;  %v1121_v49 = vld [vmem:[%s3572_s3 + $0x588] sm:$0xff]  ;;  %v1006_v50 = vld [vmem:[%s3572_s3 + $0x1f0] sm:$0xff] }
  0xea   :  { %1179 = vmatpush.msra.mxu1 %v1016_v20  ;;  %1199 = vmatpush.msra.mxu2 %v1080_v36 }
  0xeb   :  { %1160 = vmatpush.msra.mxu0 %v948_v51  ;;  %1220 = vmatpush.msra.mxu3 %v949_v52  ;;  %v1009_v51 = vld [vmem:[%s3572_s3 + $0x208] sm:$0xff]  ;;  %v1010_v52 = vld [vmem:[%s3572_s3 + $0x210] sm:$0xff] }
  0xec   :  { %1180 = vmatpush.msra.mxu1 %v1012_v25  ;;  %1200 = vmatpush.msra.mxu2 %v1076_v41  ;;  %v958_v41 = vld [vmem:[%s3572_s3 + $0x70] sm:$0xff] }
  0xed   :  { %1161 = vmatpush.msra.mxu0 %v944_v53  ;;  %1221 = vmatpush.msra.mxu3 %v945_v55  ;;  %v1117_v55 = vld [vmem:[%s3572_s3 + $0x568] sm:$0xff] }
  0xee   :  { %1181 = vmatpush.msra.mxu1 %v1008_v30  ;;  %1201 = vmatpush.msra.mxu2 %v1072_v45  ;;  %v3096_v53 = vpop.f32.mrf.mxu2  ;;  %v1134_v45 = vld [vmem:[%s3572_s3 + $0x5f0] sm:$0xff] }
  0xef   :  { %1226 = vmatpush.msrb.mxu0 %v1069_v56  ;;  %1286 = vmatpush.msrb.mxu3 %v1070_v57  ;;  %v1002_v56 = vld [vmem:[%s3572_s3 + $0x1d0] sm:$0xff]  ;;  %v1113_v57 = vld [vmem:[%s3572_s3 + $0x548] sm:$0xff] }
  0xf0   :  { %1246 = vmatpush.msrb.mxu1 %v1133_v34  ;;  %1266 = vmatpush.msrb.mxu2 %v1006_v50  ;;  %v1131_v50 = vld [vmem:[%s3572_s3 + $0x5d8] sm:$0xff] }
  0xf1   :  { %1227 = vmatpush.msrb.mxu0 %v1065_v58  ;;  %1287 = vmatpush.msrb.mxu3 %v1066_v59  ;;  %v998_v58 = vld [vmem:[%s3572_s3 + $0x1b0] sm:$0xff]  ;;  %v3110_v59 = vpop.f32.mrf.mxu3 }
  0xf2   :  { %1247 = vmatpush.msrb.mxu1 %v1129_v40  ;;  %1267 = vmatpush.msrb.mxu2 %v1002_v56  ;;  %v1073_v40 = vld [vmem:[%s3572_s3 + $0x408] sm:$0xff]  ;;  %v1122_v56 = vld [vmem:[%s3572_s3 + $0x590] sm:$0xff] }
  0xf3   :  { %1228 = vmatpush.msrb.mxu0 %v1061_v61  ;;  %1288 = vmatpush.msrb.mxu3 %v1062_v62  ;;  %v3112_v61 = vpop.f32.mrf.mxu0  ;;  %v1109_v62 = vld [vmem:[%s3572_s3 + $0x528] sm:$0xff] }
  0xf4   :  { %1248 = vmatpush.msrb.mxu1 %v1125_v44  ;;  %1268 = vmatpush.msrb.mxu2 %v998_v58  ;;  %v1118_v58 = vld [vmem:[%s3572_s3 + $0x570] sm:$0xff] }
  0xf5   :  { %1229 = vmatpush.msrb.mxu0 %v1057_v63  ;;  %1289 = vmatpush.msrb.mxu3 %v1058_v0  ;;  %v994_v63 = vld [vmem:[%s3572_s3 + $0x190] sm:$0xff]  ;;  %v1105_v0 = vld [vmem:[%s3572_s3 + $0x508] sm:$0xff] }
  0xf6   :  { %1249 = vmatpush.msrb.mxu1 %v1121_v49  ;;  %1269 = vmatpush.msrb.mxu2 %v994_v63  ;;  %v1130_v49 = vld [vmem:[%s3572_s3 + $0x5d0] sm:$0xff] }
  0xf7   :  { %1230 = vmatpush.msrb.mxu0 %v1053_v1  ;;  %1290 = vmatpush.msrb.mxu3 %v1054_v2  ;;  %v990_v1 = vld [vmem:[%s3572_s3 + $0x170] sm:$0xff]  ;;  %v3126_v2 = vpop.f32.mrf.mxu1 }
  0xf8   :  { %1250 = vmatpush.msrb.mxu1 %v1117_v55  ;;  %1270 = vmatpush.msrb.mxu2 %v990_v1  ;;  %v1127_v55 = vld [vmem:[%s3572_s3 + $0x5b8] sm:$0xff] }
  0xf9   :  { %1231 = vmatpush.msrb.mxu0 %v1049_v5  ;;  %1291 = vmatpush.msrb.mxu3 %v1050_v6  ;;  %v986_v5 = vld [vmem:[%s3572_s3 + $0x150] sm:$0xff]  ;;  %v3139_v6 = vld [vmem:[%s3573_s2] sm:$0xff]  ;;  %v1115_v1 = vld [vmem:[%s3572_s3 + $0x558] sm:$0xff] }
  0xfa   :  { %1251 = vmatpush.msrb.mxu1 %v1113_v57  ;;  %v434_v12 = vperm.slane %v3139_v6, 6  ;;  %1271 = vmatpush.msrb.mxu2 %v986_v5  ;;  %v1123_v57 = vld [vmem:[%s3572_s3 + $0x598] sm:$0xff] }
  0xfb   :  { %1232 = vmatpush.msrb.mxu0 %v1045_v9  ;;  %1292 = vmatpush.msrb.mxu3 %v1046_v10  ;;  %v428_v9 = vperm.slane %v3139_v6, 0  ;;  %v431_v10 = vperm.slane %v3139_v6, 3 }
  0xfc   :  { %1252 = vmatpush.msrb.mxu1 %v1109_v62  ;;  %1272 = vmatpush.msrb.mxu2 %v982_v8  ;;  %v1119_v62 = vld [vmem:[%s3572_s3 + $0x578] sm:$0xff] }
  0xfd   :  { %1233 = vmatpush.msrb.mxu0 %v1041_v13  ;;  %1293 = vmatpush.msrb.mxu3 %v1042_v14  ;;  %v3155_v13 = vld [vmem:[%s3573_s2 + $0x8] sm:$0xf]  ;;  %v590_v20 = vadd.f32 %v3028_v29, %v431_v10  ;;  %v1111_v8 = vld [vmem:[%s3572_s3 + $0x538] sm:$0xff]  ;;  %v435_v10 = vperm.slane %v3139_v6, 7 }
  0xfe   :  { %1253 = vmatpush.msrb.mxu1 %v1105_v0  ;;  %1273 = vmatpush.msrb.mxu2 %v978_v16  ;;  %v1114_v0 = vld [vmem:[%s3572_s3 + $0x550] sm:$0xff]  ;;  %v438_v16 = vperm.slane %v3155_v13, 2 }
  0xff   :  { %1234 = vmatpush.msrb.mxu0 %v1037_v60  ;;  %1294 = vmatpush.msrb.mxu3 %v1038_v17  ;;  %v437_v60 = vperm.slane %v3155_v13, 1  ;;  %v470_v17 = vadd.f32 %v3000_v19, %v428_v9  ;;  %v1085_v19 = vld [vmem:[%s3572_s3 + $0x468] sm:$0xff]  ;;  %v610_v30 = vadd.f32 %v3056_v39, %v590_v20  ;;  %v429_v9 = vperm.slane %v3139_v6, 1 }
 0x100   :  { %1254 = vmatpush.msrb.mxu1 %v1101_v4  ;;  %v432_v4 = vperm.slane %v3139_v6, 4 }
 0x101   :  { %1235 = vmatpush.msrb.mxu0 %v1033_v22  ;;  %1295 = vmatpush.msrb.mxu3 %v1034_v23  ;;  %v1089_v22 = vld [vmem:[%s3572_s3 + $0x488] sm:$0xff]  ;;  %v974_v23 = vld [vmem:[%s3572_s3 + $0xf0] sm:$0xff]  ;;  %v490_v29 = vadd.f32 %v3014_v24, %v470_v17  ;;  %v1103_v17 = vld [vmem:[%s3572_s3 + $0x4f8] sm:$0xff]  ;;  %v510_v20 = vadd.f32 %v2978_v54, %v429_v9 }
 0x102   :  { %1255 = vmatpush.msrb.mxu1 %v1097_v7  ;;  %1274 = vmatpush.msrb.mxu2 %v974_v23  ;;  %v1077_v24 = vld [vmem:[%s3572_s3 + $0x428] sm:$0xff]  ;;  %v1110_v7 = vld [vmem:[%s3572_s3 + $0x530] sm:$0xff]  ;;  %v1059_v9 = vld [vmem:[%s3572_s3 + $0x398] sm:$0xff] }
 0x103   :  { %1236 = vmatpush.msrb.mxu0 %v1029_v27  ;;  %1296 = vmatpush.msrb.mxu3 %v1030_v28  ;;  %v970_v27 = vld [vmem:[%s3572_s3 + $0xd0] sm:$0xff] }
 0x104   :  { %1256 = vmatpush.msrb.mxu1 %v1093_v15  ;;  %1275 = vmatpush.msrb.mxu2 %v970_v27  ;;  %v630_v15 = vadd.f32 %v3112_v61, %v432_v4  ;;  %v1098_v23 = vld [vmem:[%s3572_s3 + $0x4d0] sm:$0xff]  ;;  %v1067_v4 = vld [vmem:[%s3572_s3 + $0x3d8] sm:$0xff] }
 0x105   :  { %1237 = vmatpush.msrb.mxu0 %v1025_v32  ;;  %1297 = vmatpush.msrb.mxu3 %v1026_v33  ;;  %v1081_v32 = vld [vmem:[%s3572_s3 + $0x448] sm:$0xff]  ;;  %v966_v33 = vld [vmem:[%s3572_s3 + $0xb0] sm:$0xff] }
 0x106   :  { %1257 = vmatpush.msrb.mxu1 %v1089_v22  ;;  %1276 = vmatpush.msrb.mxu2 %v966_v33  ;;  %v433_v22 = vperm.slane %v3139_v6, 5  ;;  %v650_v54 = vadd.f32 %v3126_v2, %v630_v15  ;;  %v439_v33 = vperm.slane %v3155_v13, 3  ;;  %v1051_v15 = vld [vmem:[%s3572_s3 + $0x358] sm:$0xff] }
 0x107   :  { %1238 = vmatpush.msrb.mxu0 %v1021_v37  ;;  %1298 = vmatpush.msrb.mxu3 %v1022_v38  ;;  %v962_v37 = vld [vmem:[%s3572_s3 + $0x90] sm:$0xff]  ;;  %v932_v38 = vmax.f32 %v490_v29, %v610_v30 }
 0x108   :  { %1258 = vmatpush.msrb.mxu1 %v1085_v19  ;;  %1277 = vmatpush.msrb.mxu2 %v962_v37  ;;  %v436_v19 = vperm.slane %v3155_v13, 0  ;;  %v670_v2 = vadd.f32 %v3096_v53, %v433_v22  ;;  %v1086_v53 = vld [vmem:[%s3572_s3 + $0x470] sm:$0xff]  ;;  %v1039_v22 = vld [vmem:[%s3572_s3 + $0x2f8] sm:$0xff] }
 0x109   :  { %1239 = vmatpush.msrb.mxu0 %v1017_v42  ;;  %1299 = vmatpush.msrb.mxu3 %v1018_v43  ;;  %v954_v43 = vld [vmem:[%s3572_s3 + $0x50] sm:$0xff] }
 0x10a   :  { %1259 = vmatpush.msrb.mxu1 %v1081_v32  ;;  %1278 = vmatpush.msrb.mxu2 %v958_v41  ;;  %v1082_v41 = vld [vmem:[%s3572_s3 + $0x450] sm:$0xff] }
 0x10b   :  { %1240 = vmatpush.msrb.mxu0 %v1013_v46  ;;  %1300 = vmatpush.msrb.mxu3 %v1014_v47  ;;  %v1135_v46 = vld [vmem:[%s3572_s3 + $0x5f8] sm:$0xff]  ;;  %v950_v47 = vld [vmem:[%s3572_s3 + $0x30] sm:$0xff] }
 0x10c   :  { %1260 = vmatpush.msrb.mxu1 %v1077_v24  ;;  %1279 = vmatpush.msrb.mxu2 %v954_v43 }
 0x10d   :  { %1241 = vmatpush.msrb.mxu0 %v1009_v51  ;;  %1301 = vmatpush.msrb.mxu3 %v1010_v52  ;;  %v946_v51 = vld [vmem:[%s3572_s3 + $0x10] sm:$0xff] }
 0x10e   :  { %1261 = vmatpush.msrb.mxu1 %v1073_v40  ;;  %v1126_v52 = vld [vmem:[%s3572_s3 + $0x5b0] sm:$0xff]  ;;  %1280 = vmatpush.msrb.mxu2 %v950_v47 }
 0x110   :  { %1281 = vmatpush.msrb.mxu2 %v946_v51 }
 0x123   :  { %v3128_v3 = vpop.f32.mrf.mxu2 }
 0x124   :  { %v750_v61 = vadd.f32 %v3128_v3, %v435_v10  ;;  %v1094_v3 = vld [vmem:[%s3572_s3 + $0x4b0] sm:$0xff]  ;;  %v979_v10 = vld [vmem:[%s3572_s3 + $0x118] sm:$0xff] }
 0x126   :  { %v3149_v11 = vpop.f32.mrf.mxu3  ;;  %v709_v14 = vpop.f32.mrf.mxu0 }
 0x127   :  { %v710_v21 = vadd.f32 %v709_v14, %v434_v12  ;;  %v1106_v12 = vld [vmem:[%s3572_s3 + $0x510] sm:$0xff]  ;;  %v1107_v14 = vld [vmem:[%s3572_s3 + $0x518] sm:$0xff] }
 0x129   :  { %v729_v25 = vpop.f32.mrf.mxu1 }
 0x12a   :  { %v730_v31 = vadd.f32 %v729_v25, %v710_v21  ;;  %v430_v21 = vperm.slane %v3139_v6, 2  ;;  %v1099_v25 = vld [vmem:[%s3572_s3 + $0x4d8] sm:$0xff] }
 0x12b   :  { %v1095_v6 = vld [vmem:[%s3572_s3 + $0x4b8] sm:$0xff] }
 0x12c   :  { %v829_v26 = vpop.f32.mrf.mxu2  ;;  %v550_v29 = vadd.f32 %v3045_v35, %v430_v21  ;;  %v963_v21 = vld [vmem:[%s3572_s3 + $0x98] sm:$0xff] }
 0x12d   :  { %v830_v28 = vadd.f32 %v829_v26, %v437_v60  ;;  %v1102_v60 = vld [vmem:[%s3572_s3 + $0x4f0] sm:$0xff] }
 0x12e   :  { %v570_v37 = vadd.f32 %v3082_v48, %v550_v29  ;;  %v1007_v48 = vld [vmem:[%s3572_s3 + $0x1f8] sm:$0xff] }
 0x12f   :  { %v849_v34 = vpop.f32.mrf.mxu3  ;;  %v1011_v29 = vld [vmem:[%s3572_s3 + $0x218] sm:$0xff] }
 0x130   :  { %v850_v36 = vadd.f32 %v849_v34, %v830_v28  ;;  %v530_v28 = vadd.f32 %v2998_v18, %v510_v20  ;;  %v1090_v34 = vld [vmem:[%s3572_s3 + $0x490] sm:$0xff]  ;;  %v1091_v18 = vld [vmem:[%s3572_s3 + $0x498] sm:$0xff] }
 0x131   :  { %v1043_v20 = vld [vmem:[%s3572_s3 + $0x318] sm:$0xff] }
 0x132   :  { %v935_v39 = vmax.f32 %v730_v31, %v850_v36  ;;  %v770_v31 = vadd.f32 %v3149_v11, %v750_v61  ;;  %v933_v35 = vmax.f32 %v530_v28, %v650_v54  ;;  %v1087_v11 = vld [vmem:[%s3572_s3 + $0x478] sm:$0xff] }
 0x133   :  { %v959_v61 = vld [vmem:[%s3572_s3 + $0x78] sm:$0xff] }
 0x134   :  { %v938_v42 = vmax.f32 %v932_v38, %v935_v39  ;;  %v690_v38 = vadd.f32 %v3110_v59, %v670_v2  ;;  %v1078_v59 = vld [vmem:[%s3572_s3 + $0x430] sm:$0xff]  ;;  %v951_v54 = vld [vmem:[%s3572_s3 + $0x38] sm:$0xff]  ;;  %v1403_v2 = vld [vmem:[%s3575_s5 + $0x68] sm:$0xff] }
 0x135   :  { %v1015_v28 = vld [vmem:[%s3572_s3 + $0x238] sm:$0xff] }
 0x136   :  { %v3201_v44 = vmax.f32 %v938_v42, 0.0  ;;  %v1083_v42 = vld [vmem:[%s3572_s3 + $0x458] sm:$0xff] }
 0x138   :  { %1162 = vmatmul.f32.vlgmr.msra.gmra.mxu0 %v3201_v44  ;;  %1222 = vmatmul.f32.vlgmr.msra.gmra.mxu3 %v3201_v44 }
 0x139   :  { %1306 = vmatpush.msra.mxu0 %v1134_v45  ;;  %1366 = vmatpush.msra.mxu3 %v1135_v46 }
 0x13b   :  { %1307 = vmatpush.msra.mxu0 %v1130_v49  ;;  %1367 = vmatpush.msra.mxu3 %v1131_v50  ;;  %v1079_v49 = vld [vmem:[%s3572_s3 + $0x438] sm:$0xff]  ;;  %v934_v50 = vmax.f32 %v570_v37, %v690_v38  ;;  %v1391_v37 = vld [vmem:[%s3575_s5 + $0x8] sm:$0xff]  ;;  %v1390_v38 = vld [vmem:[%s3575_s5] sm:$0xff] }
 0x13d   :  { %1308 = vmatpush.msra.mxu0 %v1126_v52  ;;  %1368 = vmatpush.msra.mxu3 %v1127_v55  ;;  %v1003_v52 = vld [vmem:[%s3572_s3 + $0x1d8] sm:$0xff]  ;;  %v1074_v55 = vld [vmem:[%s3572_s3 + $0x410] sm:$0xff] }
 0x13f   :  { %1309 = vmatpush.msra.mxu0 %v1122_v56  ;;  %1369 = vmatpush.msra.mxu3 %v1123_v57  ;;  %v1075_v56 = vld [vmem:[%s3572_s3 + $0x418] sm:$0xff] }
 0x140   :  { %v789_v63 = vpop.f32.mrf.mxu0 }
 0x141   :  { %1310 = vmatpush.msra.mxu0 %v1118_v58  ;;  %1370 = vmatpush.msra.mxu3 %v1119_v62  ;;  %v790_v36 = vadd.f32 %v789_v63, %v436_v19  ;;  %v999_v58 = vld [vmem:[%s3572_s3 + $0x1b8] sm:$0xff] }
 0x142   :  { %v809_v5 = vpop.f32.mrf.mxu1  ;;  %v995_v63 = vld [vmem:[%s3572_s3 + $0x198] sm:$0xff] }
 0x143   :  { %1311 = vmatpush.msra.mxu0 %v1114_v0  ;;  %1371 = vmatpush.msra.mxu3 %v1115_v1  ;;  %v810_v45 = vadd.f32 %v809_v5, %v790_v36  ;;  %v1071_v0 = vld [vmem:[%s3572_s3 + $0x3f8] sm:$0xff]  ;;  %v1396_v36 = vld [vmem:[%s3575_s5 + $0x30] sm:$0xff] }
 0x144   :  { %v991_v1 = vld [vmem:[%s3572_s3 + $0x178] sm:$0xff] }
 0x145   :  { %1312 = vmatpush.msra.mxu0 %v1110_v7  ;;  %1372 = vmatpush.msra.mxu3 %v1111_v8  ;;  %v987_v5 = vld [vmem:[%s3572_s3 + $0x158] sm:$0xff] }
 0x146   :  { %v1063_v7 = vld [vmem:[%s3572_s3 + $0x3b8] sm:$0xff] }
 0x147   :  { %1313 = vmatpush.msra.mxu0 %v1106_v12  ;;  %1373 = vmatpush.msra.mxu3 %v1107_v14  ;;  %v983_v8 = vld [vmem:[%s3572_s3 + $0x138] sm:$0xff] }
 0x148   :  { %v1055_v12 = vld [vmem:[%s3572_s3 + $0x378] sm:$0xff] }
 0x149   :  { %v869_v26 = vpop.f32.mrf.mxu0  ;;  %1314 = vmatpush.msra.mxu0 %v1102_v60  ;;  %1374 = vmatpush.msra.mxu3 %v1103_v17  ;;  %v975_v14 = vld [vmem:[%s3572_s3 + $0xf8] sm:$0xff] }
 0x14a   :  { %v870_v27 = vadd.f32 %v869_v26, %v438_v16  ;;  %v971_v16 = vld [vmem:[%s3572_s3 + $0xd8] sm:$0xff] }
 0x14b   :  { %v889_v30 = vpop.f32.mrf.mxu1  ;;  %1315 = vmatpush.msra.mxu0 %v1098_v23  ;;  %1375 = vmatpush.msra.mxu3 %v1099_v25  ;;  %v1047_v60 = vld [vmem:[%s3572_s3 + $0x338] sm:$0xff] }
 0x14c   :  { %v890_v32 = vadd.f32 %v889_v30, %v870_v27  ;;  %v967_v17 = vld [vmem:[%s3572_s3 + $0xb8] sm:$0xff] }
 0x14d   :  { %1316 = vmatpush.msra.mxu0 %v1094_v3  ;;  %1376 = vmatpush.msra.mxu3 %v1095_v6  ;;  %v1035_v23 = vld [vmem:[%s3572_s3 + $0x2d8] sm:$0xff] }
 0x14e   :  { %v936_v24 = vmax.f32 %v770_v31, %v890_v32  ;;  %v955_v25 = vld [vmem:[%s3572_s3 + $0x58] sm:$0xff]  ;;  %v1402_v31 = vld [vmem:[%s3575_s5 + $0x60] sm:$0xff] }
 0x14f   :  { %v909_v13 = vpop.f32.mrf.mxu2  ;;  %1317 = vmatpush.msra.mxu0 %v1090_v34  ;;  %1377 = vmatpush.msra.mxu3 %v1091_v18  ;;  %v1031_v26 = vld [vmem:[%s3572_s3 + $0x2b8] sm:$0xff]  ;;  %v1399_v34 = vld [vmem:[%s3575_s5 + $0x48] sm:$0xff]  ;;  %v1398_v18 = vld [vmem:[%s3575_s5 + $0x40] sm:$0xff] }
 0x150   :  { %v939_v39 = vmax.f32 %v933_v35, %v936_v24  ;;  %v910_v40 = vadd.f32 %v909_v13, %v439_v33  ;;  %v1027_v19 = vld [vmem:[%s3572_s3 + $0x298] sm:$0xff]  ;;  %v1400_v33 = vld [vmem:[%s3575_s5 + $0x50] sm:$0xff]  ;;  %v1395_v24 = vld [vmem:[%s3575_s5 + $0x28] sm:$0xff] }
 0x151   :  { %v929_v43 = vpop.f32.mrf.mxu3  ;;  %1318 = vmatpush.msra.mxu0 %v1086_v53  ;;  %1378 = vmatpush.msra.mxu3 %v1087_v11  ;;  %v947_v27 = vld [vmem:[%s3572_s3 + $0x18] sm:$0xff]  ;;  %v1394_v53 = vld [vmem:[%s3575_s5 + $0x20] sm:$0xff]  ;;  %v1392_v13 = vld [vmem:[%s3575_s5 + $0x10] sm:$0xff] }
 0x152   :  { %v3313_v46 = vmax.f32 %v939_v39, 0.0  ;;  %v930_v47 = vadd.f32 %v929_v43, %v910_v40  ;;  %v1023_v3 = vld [vmem:[%s3572_s3 + $0x278] sm:$0xff]  ;;  %v1445_v40 = vld [vmem:[%s3576_s7 + $0x70] sm:$0xff] }
 0x153   :  { %1319 = vmatpush.msra.mxu0 %v1082_v41  ;;  %1379 = vmatpush.msra.mxu3 %v1083_v42  ;;  %v1019_v6 = vld [vmem:[%s3572_s3 + $0x258] sm:$0xff]  ;;  %v1444_v41 = vld [vmem:[%s3576_s7 + $0x68] sm:$0xff]  ;;  %v1443_v42 = vld [vmem:[%s3576_s7 + $0x60] sm:$0xff] }
 0x154   :  { %v937_v51 = vmax.f32 %v810_v45, %v930_v47  ;;  %1182 = vmatmul.f32.vlgmr.msra.gmra.mxu1 %v3313_v46  ;;  %1242 = vmatmul.f32.vlgmr.msrb.gmra.mxu0 %v3313_v46  ;;  %v1405_v30 = vld [vmem:[%s3575_s5 + $0x78] sm:$0xff] }
 0x155   :  { %1302 = vmatmul.f32.vlgmr.msrb.gmra.mxu3 %v3313_v46  ;;  %1326 = vmatpush.msra.mxu1 %v1007_v48  ;;  %v1401_v32 = vld [vmem:[%s3575_s5 + $0x58] sm:$0xff]  ;;  %v1441_v48 = vld [vmem:[%s3576_s7 + $0x50] sm:$0xff] }
 0x156   :  { %v940_v57 = vmax.f32 %v934_v50, %v937_v51  ;;  %1320 = vmatpush.msra.mxu0 %v1078_v59  ;;  %1380 = vmatpush.msra.mxu3 %v1079_v49  ;;  %v1397_v35 = vld [vmem:[%s3575_s5 + $0x38] sm:$0xff]  ;;  %v1440_v59 = vld [vmem:[%s3576_s7 + $0x48] sm:$0xff]  ;;  %v1439_v50 = vld [vmem:[%s3576_s7 + $0x40] sm:$0xff] }
 0x157   :  { %1327 = vmatpush.msra.mxu1 %v1003_v52  ;;  %v1393_v11 = vld [vmem:[%s3575_s5 + $0x18] sm:$0xff]  ;;  %v1136_v51 = vld [vmem:[%s3577_s4] sm:$0xf] }
 0x158   :  { %v943_v62 = vmax.f32 %v940_v57, 0.0  ;;  %1321 = vmatpush.msra.mxu0 %v1074_v55  ;;  %1381 = vmatpush.msra.mxu3 %v1075_v56  ;;  %v1140_v55 = vperm.slane %v1136_v51, 2  ;;  %v1438_v56 = vld [vmem:[%s3576_s7 + $0x38] sm:$0xff] }
 0x159   :  { %1328 = vmatpush.msra.mxu1 %v999_v58 }
 0x15a   :  { %1202 = vmatmul.f32.vlgmr.msra.gmra.mxu2 %v943_v62  ;;  %1410 = vmatpush.msrb.mxu0 %v1405_v30  ;;  %v1485_v30 = vld [vmem:[%s3579_s9 + $0x50] sm:$0xf] }
 0x15b   :  { %1329 = vmatpush.msra.mxu1 %v995_v63  ;;  %1346 = vmatpush.msra.mxu2 %v1071_v0  ;;  %v1437_v63 = vld [vmem:[%s3576_s7 + $0x30] sm:$0xff]  ;;  %v1139_v0 = vperm.slane %v1136_v51, 1 }
 0x15c   :  { %1262 = vmatmul.f32.vlgmr.msrb.gmra.mxu1 %v943_v62  ;;  %1322 = vmatmul.f32.vlgmr.msra.gmra.mxu0 %v943_v62 }
 0x15d   :  { %1330 = vmatpush.msra.mxu1 %v991_v1  ;;  %1347 = vmatpush.msra.mxu2 %v1067_v4  ;;  %v1141_v4 = vperm.slane %v1136_v51, 3 }
 0x15e   :  { %1382 = vmatmul.f32.vlgmr.msra.gmra.mxu3 %v943_v62  ;;  %v1138_v62 = vperm.slane %v1136_v51, 0 }
 0x15f   :  { %1331 = vmatpush.msra.mxu1 %v987_v5  ;;  %1348 = vmatpush.msra.mxu2 %v1063_v7  ;;  %v1436_v5 = vld [vmem:[%s3576_s7 + $0x28] sm:$0xff] }
 0x161   :  { %1332 = vmatpush.msra.mxu1 %v983_v8  ;;  %1349 = vmatpush.msra.mxu2 %v1059_v9  ;;  %v1435_v9 = vld [vmem:[%s3576_s7 + $0x20] sm:$0xff] }
 0x162   :  { %1282 = vmatmul.f32.vlgmr.msrb.gmra.mxu2 %v3201_v44 }
 0x163   :  { %1333 = vmatpush.msra.mxu1 %v979_v10  ;;  %1350 = vmatpush.msra.mxu2 %v1055_v12 }
 0x165   :  { %1334 = vmatpush.msra.mxu1 %v975_v14  ;;  %1351 = vmatpush.msra.mxu2 %v1051_v15 }
 0x167   :  { %1335 = vmatpush.msra.mxu1 %v971_v16  ;;  %1352 = vmatpush.msra.mxu2 %v1047_v60  ;;  %v1434_v16 = vld [vmem:[%s3576_s7 + $0x18] sm:$0xff] }
 0x169   :  { %1336 = vmatpush.msra.mxu1 %v967_v17  ;;  %1353 = vmatpush.msra.mxu2 %v1043_v20 }
 0x16b   :  { %1337 = vmatpush.msra.mxu1 %v963_v21  ;;  %1354 = vmatpush.msra.mxu2 %v1039_v22 }
 0x16d   :  { %1338 = vmatpush.msra.mxu1 %v959_v61  ;;  %1355 = vmatpush.msra.mxu2 %v1035_v23 }
 0x16f   :  { %1339 = vmatpush.msra.mxu1 %v955_v25  ;;  %1356 = vmatpush.msra.mxu2 %v1031_v26 }
 0x171   :  { %1340 = vmatpush.msra.mxu1 %v951_v54  ;;  %1357 = vmatpush.msra.mxu2 %v1027_v19 }
 0x173   :  { %1341 = vmatpush.msra.mxu1 %v947_v27  ;;  %1358 = vmatpush.msra.mxu2 %v1023_v3 }
 0x174   :  { %1342 = vmatmul.f32.vlgmr.msra.gmra.mxu1 %v3201_v44  ;;  %v1404_v44 = vld [vmem:[%s3575_s5 + $0x70] sm:$0xff] }
 0x175   :  { %1359 = vmatpush.msra.mxu2 %v1019_v6  ;;  %1411 = vmatpush.msrb.mxu0 %v1404_v44  ;;  %v1433_v6 = vld [vmem:[%s3576_s7 + $0x10] sm:$0xff]  ;;  %v1484_v44 = vld [vmem:[%s3579_s9 + $0x48] sm:$0xff] }
 0x176   :  { %1455 = vmatpush.msrb.mxu1 %v1445_v40 }
 0x177   :  { %1360 = vmatpush.msra.mxu2 %v1015_v28  ;;  %1412 = vmatpush.msrb.mxu0 %v1403_v2  ;;  %v1432_v28 = vld [vmem:[%s3576_s7 + $0x8] sm:$0xff]  ;;  %v1483_v2 = vld [vmem:[%s3579_s9 + $0x40] sm:$0xff] }
 0x178   :  { %1456 = vmatpush.msrb.mxu1 %v1444_v41 }
 0x179   :  { %1361 = vmatpush.msra.mxu2 %v1011_v29  ;;  %1413 = vmatpush.msrb.mxu0 %v1402_v31  ;;  %v1431_v29 = vld [vmem:[%s3576_s7] sm:$0xff]  ;;  %v1482_v31 = vld [vmem:[%s3579_s9 + $0x38] sm:$0xff] }
 0x17a   :  { %1362 = vmatmul.f32.vlgmr.msra.gmra.mxu2 %v3313_v46  ;;  %v1442_v46 = vld [vmem:[%s3576_s7 + $0x58] sm:$0xff]  ;;  %1457 = vmatpush.msrb.mxu1 %v1443_v42  ;;  %v1528_v42 = vld [vmem:[%s3580_s10] ss:$0 sm:$0xff] }
 0x17b   :  { %1414 = vmatpush.msrb.mxu0 %v1401_v32  ;;  %1524 = vmatpush.msk.msrb.mxu2 %vm1494_vm0, %v1485_v30  ;;  %v1481_v32 = vld [vmem:[%s3579_s9 + $0x30] sm:$0xff] }
 0x17c   :  { %1458 = vmatpush.msrb.mxu1 %v1442_v46 }
 0x17d   :  { %1415 = vmatpush.msrb.mxu0 %v1400_v33  ;;  %1504 = vmatpush.msrb.mxu2 %v1484_v44  ;;  %v1480_v33 = vld [vmem:[%s3579_s9 + $0x28] sm:$0xff] }
 0x17e   :  { %1459 = vmatpush.msrb.mxu1 %v1441_v48 }
 0x17f   :  { %1416 = vmatpush.msrb.mxu0 %v1399_v34  ;;  %1505 = vmatpush.msrb.mxu2 %v1483_v2  ;;  %v1479_v34 = vld [vmem:[%s3579_s9 + $0x20] sm:$0xff] }
 0x180   :  { %1460 = vmatpush.msrb.mxu1 %v1440_v59 }
 0x181   :  { %1417 = vmatpush.msrb.mxu0 %v1398_v18  ;;  %1506 = vmatpush.msrb.mxu2 %v1482_v31  ;;  %v1478_v18 = vld [vmem:[%s3579_s9 + $0x18] sm:$0xff] }
 0x182   :  { %1461 = vmatpush.msrb.mxu1 %v1439_v50 }
 0x183   :  { %1418 = vmatpush.msrb.mxu0 %v1397_v35  ;;  %1507 = vmatpush.msrb.mxu2 %v1481_v32  ;;  %v1526_v35 = vld [vmem:[%s3574_s6] ss:$0 sm:$0xff] }
 0x184   :  { %1462 = vmatpush.msrb.mxu1 %v1438_v56 }
 0x185   :  { %1419 = vmatpush.msrb.mxu0 %v1396_v36  ;;  %1508 = vmatpush.msrb.mxu2 %v1480_v33 }
 0x186   :  { %1463 = vmatpush.msrb.mxu1 %v1437_v63 }
 0x187   :  { %1420 = vmatpush.msrb.mxu0 %v1395_v24  ;;  %1509 = vmatpush.msrb.mxu2 %v1479_v34 }
 0x188   :  { %1464 = vmatpush.msrb.mxu1 %v1436_v5 }
 0x189   :  { %1421 = vmatpush.msrb.mxu0 %v1394_v53  ;;  %1510 = vmatpush.msrb.mxu2 %v1478_v18 }
 0x18a   :  { %1465 = vmatpush.msrb.mxu1 %v1435_v9 }
 0x18b   :  { %1422 = vmatpush.msrb.mxu0 %v1393_v11  ;;  %v1477_v11 = vld [vmem:[%s3579_s9 + $0x10] sm:$0xff] }
 0x18c   :  { %1466 = vmatpush.msrb.mxu1 %v1434_v16  ;;  %1511 = vmatpush.msrb.mxu2 %v1477_v11 }
 0x18d   :  { %1423 = vmatpush.msrb.mxu0 %v1392_v13  ;;  %v1476_v13 = vld [vmem:[%s3579_s9 + $0x8] sm:$0xff] }
 0x18e   :  { %1467 = vmatpush.msrb.mxu1 %v1433_v6  ;;  %1512 = vmatpush.msrb.mxu2 %v1476_v13 }
 0x18f   :  { %1424 = vmatpush.msrb.mxu0 %v1391_v37  ;;  %v1475_v37 = vld [vmem:[%s3579_s9] sm:$0xff] }
 0x190   :  { %1468 = vmatpush.msrb.mxu1 %v1432_v28  ;;  %1513 = vmatpush.msrb.mxu2 %v1475_v37 }
 0x191   :  { %1425 = vmatpush.msrb.mxu0 %v1390_v38  ;;  %v1527_v38 = vld [vmem:[%s3578_s8] ss:$0 sm:$0xff] }
 0x192   :  { %1469 = vmatpush.msrb.mxu1 %v1431_v29 }
 0x1b5   :  { %v1163_v45 = vpop.f32.mrf.mxu0 }
 0x1b6   :  { %v1164_v8 = vadd.f32 %v1163_v45, %v1138_v62 }
 0x1bb   :  { %v1223_v47 = vpop.f32.mrf.mxu3 }
 0x1bc   :  { %v1224_v10 = vadd.f32 %v1223_v47, %v1139_v0 }
 0x1d1   :  { %v1183_v39 = vpop.f32.mrf.mxu1  ;;  %v1243_v52 = vpop.f32.mrf.mxu0 }
 0x1d2   :  { %v1184_v12 = vadd.f32 %v1183_v39, %v1164_v8  ;;  %v1244_v17 = vadd.f32 %v1243_v52, %v1224_v10 }
 0x1d8   :  { %v1303_v57 = vpop.f32.mrf.mxu3 }
 0x1d9   :  { %v1263_v49 = vpop.f32.mrf.mxu1  ;;  %v1323_v22 = vpop.f32.mrf.mxu0 }
 0x1da   :  { %v1264_v23 = vadd.f32 %v1263_v49, %v1244_v17 }
 0x1dd   :  { %v1203_v43 = vpop.f32.mrf.mxu2 }
 0x1de   :  { %v1204_v20 = vadd.f32 %v1203_v43, %v1184_v12 }
 0x1e0   :  { %v1386_v54 = vmax.f32 %v1204_v20, %v1264_v23 }
 0x1e1   :  { %v1383_v61 = vpop.f32.mrf.mxu3 }
 0x1e5   :  { %v1283_v58 = vpop.f32.mrf.mxu2 }
 0x1e6   :  { %v1284_v1 = vadd.f32 %v1283_v58, %v1140_v55 }
 0x1e8   :  { %v1304_v14 = vadd.f32 %v1303_v57, %v1284_v1 }
 0x1ea   :  { %v1324_v25 = vadd.f32 %v1323_v22, %v1304_v14 }
 0x1f1   :  { %v1343_v7 = vpop.f32.mrf.mxu1 }
 0x1f2   :  { %v1344_v15 = vadd.f32 %v1343_v7, %v1141_v4 }
 0x1fd   :  { %v1363_v60 = vpop.f32.mrf.mxu2 }
 0x1fe   :  { %v1364_v21 = vadd.f32 %v1363_v60, %v1344_v15 }
 0x200   :  { %v1384_v26 = vadd.f32 %v1383_v61, %v1364_v21 }
 0x202   :  { %v1387_v19 = vmax.f32 %v1324_v25, %v1384_v26 }
 0x204   :  { %v1388_v27 = vmax.f32 %v1386_v54, %v1387_v19 }
 0x206   :  { %v1389_v3 = vmax.f32 %v1388_v27, 0.0 }
 0x208   :  { %1426 = vmatmul.f32.vlgmr.msrb.gmra.mxu0 %v1389_v3 }
 0x285   :  { %v1427_v36 = vpop.f32.mrf.mxu0 }
 0x286   :  { %v1428_v24 = vadd.f32 %v1526_v35, %v1427_v36 }
 0x288   :  { %v1430_v53 = vmax.f32 %v1428_v24, 0.0 }
 0x28a   :  { %1523 = vmatmul.msk.f32.vlgmr.msrb.gmra.mxu1 %vm1450_vm1, %v1430_v53 }
 0x307   :  { %v1471_v39 = vpop.f32.mrf.mxu1 }
 0x308   :  { %v1472_v40 = vadd.f32 %v1527_v38, %v1471_v39 }
 0x30a   :  { %v1474_v41 = vmax.f32 %v1472_v40, 0.0 }
 0x30c   :  { %1525 = vmatmul.msk.f32.vlgmr.msrb.gmra.mxu2 %vm1490_vm2, %v1474_v41 }
 0x38f   :  { %v1515_v43 = vpop.f32.mrf.mxu2 }
 0x390   :  { %v1516_v45 = vadd.f32 %v1528_v42, %v1515_v43 }
 0x392   :  { %1518 = vst [vmem:[%s3581_s11] sm:$0xff] %v1516_v45 }

</bundles_post_ra>
